<compile_context>
chip_gen: v7x
topology: tpu7x:2x2x1
jax: 0.10.0
libtpu: 0.0.40
codegen_flags: <defaults>
</compile_context>

<pallas_src>
import functools

import jax
import jax.numpy as jnp
from jax.experimental import pallas as pl
from jax.experimental.pallas import tpu as pltpu


def _round_up(x, m):
    return ((x + m - 1) // m) * m


# -----------------------------------------------------------------------------
# Pallas kernel:  x -> Linear+ReLU -> Linear+ReLU -> fused head Linear (lane-dense)
# -----------------------------------------------------------------------------
def _mano_head_kernel(x_ref, w1_ref, b1_ref, w2_ref, b2_ref, wh_ref, bh_ref,
                      out_ref):
    # base_layers[0]: Linear(D0 -> D1) + ReLU   (MXU matmul, f32 accumulate)
    x = x_ref[...].astype(w1_ref.dtype)
    h1 = jnp.dot(x, w1_ref[...], preferred_element_type=jnp.float32) + b1_ref[...]
    h1 = jnp.maximum(h1, 0.0)

    # base_layers[1]: Linear(D1 -> D2) + ReLU
    h2 = jnp.dot(h1.astype(w2_ref.dtype), w2_ref[...],
                 preferred_element_type=jnp.float32) + b2_ref[...]
    h2 = jnp.maximum(h2, 0.0)

    # Fused heads: [pose_reg | shape_reg | zero-pad] -> one lane-dense (TB, 128)
    out_ref[...] = (jnp.dot(h2.astype(wh_ref.dtype), wh_ref[...],
                            preferred_element_type=jnp.float32)
                    + bh_ref[...]).astype(out_ref.dtype)


def mano_head_pallas(inp, params, *, tile_b=256):
    """Run the fused ManoHead MLP kernel.

    inp: [B, base_neurons[0]] float32
    returns (pose [B, pose_size], shape [B, shape_size]) float32
    """
    B, D0 = inp.shape
    w1, b1 = params["w1"], params["b1"]
    w2, b2 = params["w2"], params["b2"]
    wh, bh = params["wh"], params["bh"]
    pose_size = params["pose_size"]
    shape_size = params["shape_size"]
    D1 = w1.shape[1]
    D2 = w2.shape[1]
    H = wh.shape[1]                       # head output width, padded to 128 lanes

    # Batch tile: multiple of 8 sublanes; pad B up so the grid divides evenly.
    TB = min(tile_b, _round_up(B, 8))
    B_pad = _round_up(B, TB)
    if B_pad != B:
        inp = jnp.pad(inp, ((0, B_pad - B), (0, 0)))
    grid = (B_pad // TB,)

    # VMEM budget (per step, well under the 32 MiB scoped default / 64 MiB v7x):
    #   x tile: TB*D0*4 (x2 double-buffer) + out tile: TB*H*4 (x2) + resident weights.
    itemsize = jnp.dtype(w1.dtype).itemsize
    assert (2 * TB * (D0 + H) * 4
            + (D0 * D1 + D1 * D2 + D2 * H) * itemsize) < 16 * 1024 * 1024

    flops = 2 * B_pad * (D0 * D1 + D1 * D2 + D2 * H)
    bytes_accessed = (B_pad * D0 * 4 + B_pad * H * 4
                      + (D0 * D1 + D1 * D2 + D2 * H) * itemsize
                      + (D1 + D2 + H) * 4)
    cost = pl.CostEstimate(flops=flops, transcendentals=0,
                           bytes_accessed=bytes_accessed)

    out = pl.pallas_call(
        _mano_head_kernel,
        out_shape=jax.ShapeDtypeStruct((B_pad, H), jnp.float32),
        grid=grid,
        in_specs=[
            pl.BlockSpec((TB, D0), lambda i: (i, 0)),   # x: tiled on batch
            pl.BlockSpec((D0, D1), lambda i: (0, 0)),   # weights/biases: VMEM-resident
            pl.BlockSpec((1, D1), lambda i: (0, 0)),
            pl.BlockSpec((D1, D2), lambda i: (0, 0)),
            pl.BlockSpec((1, D2), lambda i: (0, 0)),
            pl.BlockSpec((D2, H), lambda i: (0, 0)),
            pl.BlockSpec((1, H), lambda i: (0, 0)),
        ],
        out_specs=pl.BlockSpec((TB, H), lambda i: (i, 0)),
        compiler_params=pltpu.CompilerParams(
            dimension_semantics=("parallel",)),
        cost_estimate=cost,
    )(inp, w1, b1, w2, b2, wh, bh)

    pose = out[:B, :pose_size]
    shape = out[:B, pose_size:pose_size + shape_size]
    return pose, shape


# -----------------------------------------------------------------------------
# Parameter initialization (torch.nn.Linear default: U(-1/sqrt(fan_in), +1/sqrt(fan_in)))
# -----------------------------------------------------------------------------
def _linear_init(key, fan_in, fan_out, dtype):
    kw, kb = jax.random.split(key)
    bound = 1.0 / jnp.sqrt(jnp.float32(fan_in))
    w = jax.random.uniform(kw, (fan_in, fan_out), jnp.float32, -bound, bound)
    b = jax.random.uniform(kb, (1, fan_out), jnp.float32, -bound, bound)
    return w.astype(dtype), b.astype(jnp.float32)   # biases stay f32 (added post-accum)


def init_mano_head_params(key, base_neurons=(512, 512, 512), ncomps=15,
                          use_pca=True, use_shape=True,
                          weight_dtype=jnp.float32):
    """weight_dtype=jnp.bfloat16 is recommended on v6e/v7x (f32 accumulation kept)."""
    mano_pose_size = ncomps + 3 if use_pca else 16 * 9
    shape_size = 10 if use_shape else 1
    keys = jax.random.split(key, 4)
    w1, b1 = _linear_init(keys[0], base_neurons[0], base_neurons[1], weight_dtype)
    w2, b2 = _linear_init(keys[1], base_neurons[1], base_neurons[2], weight_dtype)
    wp, bp = _linear_init(keys[2], base_neurons[2], mano_pose_size, weight_dtype)
    ws, bs = _linear_init(keys[3], base_neurons[2], shape_size, weight_dtype)

    # Fuse the two heads into one lane-dense (multiple-of-128) weight/bias.
    head_cols = _round_up(mano_pose_size + shape_size, 128)
    pad = head_cols - (mano_pose_size + shape_size)
    wh = jnp.concatenate(
        [wp, ws, jnp.zeros((base_neurons[2], pad), dtype=weight_dtype)], axis=1)
    bh = jnp.concatenate(
        [bp, bs, jnp.zeros((1, pad), dtype=jnp.float32)], axis=1)

    return {"w1": w1, "b1": b1, "w2": w2, "b2": b2,
            "wh": wh, "bh": bh,
            "pose_size": mano_pose_size, "shape_size": shape_size}


# -----------------------------------------------------------------------------
# Full ManoHead.forward equivalent (glue in plain JAX)
# -----------------------------------------------------------------------------
def mano_head_forward(inp, params, *, tile_b=256):
    pose, shape = mano_head_pallas(inp, params, tile_b=tile_b)

    # use_pca=True -> mano_pose is the raw pose regression (PCA coeffs + global rot)
    mano_pose = pose

    # TODO(synk): ManoLayer (articulated MANO hand model) requires external MANO
    # model assets (hands_mean / hands_components / shapedirs / J_regressor ...),
    # so verts/joints/poses/global_trans/rot_center are not reproduced here.
    verts = None
    joints = None
    poses = None
    global_trans = None
    rot_center = None

    scale_trans = None                                         # depth=False default
    valid_idx = jnp.ones((inp.shape[0], 1), dtype=jnp.int32)   # torch .long(); int32 on TPU
    mean_pose = jnp.zeros((45,), dtype=jnp.float32)            # placeholder for smpl_data['hands_mean']

    return {"verts": verts, "joints": joints, "shape": shape, "pcas": mano_pose,
            "pose": poses, "global_trans": global_trans, "rot_center": rot_center,
            "scale_trans": scale_trans, "vis": valid_idx, "mean_pose": mean_pose}


# -----------------------------------------------------------------------------
if __name__ == "__main__":
    # Module defaults: base_neurons=[512, 512, 512], ncomps=15 (pose head = 18, shape = 10).
    B = 8
    BASE = (512, 512, 512)
    NCOMPS = 15

    key = jax.random.PRNGKey(0)
    k_inp, k_params = jax.random.split(key)
    inp = jax.random.normal(k_inp, (B, BASE[0]), dtype=jnp.float32)
    params = init_mano_head_params(k_params, base_neurons=BASE, ncomps=NCOMPS)

    results = mano_head_forward(inp, params)
    jax.block_until_ready(results["pcas"])
    jax.block_until_ready(results["shape"])

    # Shape / finiteness sanity.
    assert results["pcas"].shape == (B, NCOMPS + 3)
    assert results["shape"].shape == (B, 10)
    assert bool(jnp.all(jnp.isfinite(results["pcas"])))
    assert bool(jnp.all(jnp.isfinite(results["shape"])))

    # Numerical check against a pure-JAX reference of the same MLP.
    def ref(x, p):
        h1 = jnp.maximum(x @ p["w1"].astype(jnp.float32) + p["b1"], 0.0)
        h2 = jnp.maximum(h1 @ p["w2"].astype(jnp.float32) + p["b2"], 0.0)
        out = h2 @ p["wh"].astype(jnp.float32) + p["bh"]
        return out[:, :p["pose_size"]], out[:, p["pose_size"]:p["pose_size"] + p["shape_size"]]

    pose_ref, shape_ref = ref(inp, params)
    assert bool(jnp.allclose(results["pcas"], pose_ref, atol=1e-4, rtol=1e-4))
    assert bool(jnp.allclose(results["shape"], shape_ref, atol=1e-4, rtol=1e-4))

    print("KERNEL_OK")
</pallas_src>

<mosaic_0001>
module attributes {stable_mosaic.version = 11 : i64} {
  func.func @_mano_head_kernel(%arg0: i32, %arg1: memref<8x512xf32, #tpu.memory_space<vmem>>, %arg2: memref<512x512xf32, #tpu.memory_space<vmem>>, %arg3: memref<1x512xf32, #tpu.memory_space<vmem>>, %arg4: memref<512x512xf32, #tpu.memory_space<vmem>>, %arg5: memref<1x512xf32, #tpu.memory_space<vmem>>, %arg6: memref<512x128xf32, #tpu.memory_space<vmem>>, %arg7: memref<1x128xf32, #tpu.memory_space<vmem>>, %arg8: memref<8x128xf32, #tpu.memory_space<vmem>>) attributes {dimension_semantics = [#tpu.dimension_semantics<parallel>], iteration_bounds = array<i64: 1>, scalar_prefetch = 0 : i64, scratch_operands = 0 : i64, tpu.core_type = #tpu.core_type<tc>, window_params = [{transform_indices = @transform_0, window_bounds = array<i64: 8, 512>}, {pipeline_mode = #tpu.pipeline_mode<synchronous>, transform_indices = @transform_1, window_bounds = array<i64: 512, 512>}, {pipeline_mode = #tpu.pipeline_mode<synchronous>, transform_indices = @transform_2, window_bounds = array<i64: 1, 512>}, {pipeline_mode = #tpu.pipeline_mode<synchronous>, transform_indices = @transform_3, window_bounds = array<i64: 512, 512>}, {pipeline_mode = #tpu.pipeline_mode<synchronous>, transform_indices = @transform_4, window_bounds = array<i64: 1, 512>}, {pipeline_mode = #tpu.pipeline_mode<synchronous>, transform_indices = @transform_5, window_bounds = array<i64: 512, 128>}, {pipeline_mode = #tpu.pipeline_mode<synchronous>, transform_indices = @transform_6, window_bounds = array<i64: 1, 128>}, {transform_indices = @transform_7, window_bounds = array<i64: 8, 128>}]} {
    %c0 = arith.constant 0 : index
    %c0_0 = arith.constant 0 : index
    %0 = vector.load %arg1[%c0, %c0_0] : memref<8x512xf32, #tpu.memory_space<vmem>>, vector<8x512xf32>
    %c0_1 = arith.constant 0 : index
    %c0_2 = arith.constant 0 : index
    %1 = vector.load %arg2[%c0_1, %c0_2] : memref<512x512xf32, #tpu.memory_space<vmem>>, vector<512x512xf32>
    %cst = arith.constant dense<0.000000e+00> : vector<8x512xf32>
    %2 = tpu.matmul %0, %1, %cst {dimension_numbers = #tpu.dot_dimension_numbers<[1], [0], [0], [1], [0, 0, 1, 1], [], []>} : vector<8x512xf32>, vector<512x512xf32>, vector<8x512xf32> -> vector<8x512xf32>
    %c0_3 = arith.constant 0 : index
    %c0_4 = arith.constant 0 : index
    %3 = vector.load %arg3[%c0_3, %c0_4] : memref<1x512xf32, #tpu.memory_space<vmem>>, vector<1x512xf32>
    %4 = vector.broadcast %3 : vector<1x512xf32> to vector<8x512xf32>
    %5 = arith.addf %2, %4 : vector<8x512xf32>
    %cst_5 = arith.constant 0.000000e+00 : f32
    %6 = vector.broadcast %cst_5 : f32 to vector<8x512xf32>
    %7 = arith.maximumf %5, %6 : vector<8x512xf32>
    %c0_6 = arith.constant 0 : index
    %c0_7 = arith.constant 0 : index
    %8 = vector.load %arg4[%c0_6, %c0_7] : memref<512x512xf32, #tpu.memory_space<vmem>>, vector<512x512xf32>
    %cst_8 = arith.constant dense<0.000000e+00> : vector<8x512xf32>
    %9 = tpu.matmul %7, %8, %cst_8 {dimension_numbers = #tpu.dot_dimension_numbers<[1], [0], [0], [1], [0, 0, 1, 1], [], []>} : vector<8x512xf32>, vector<512x512xf32>, vector<8x512xf32> -> vector<8x512xf32>
    %c0_9 = arith.constant 0 : index
    %c0_10 = arith.constant 0 : index
    %10 = vector.load %arg5[%c0_9, %c0_10] : memref<1x512xf32, #tpu.memory_space<vmem>>, vector<1x512xf32>
    %11 = vector.broadcast %10 : vector<1x512xf32> to vector<8x512xf32>
    %12 = arith.addf %9, %11 : vector<8x512xf32>
    %cst_11 = arith.constant 0.000000e+00 : f32
    %13 = vector.broadcast %cst_11 : f32 to vector<8x512xf32>
    %14 = arith.maximumf %12, %13 : vector<8x512xf32>
    %c0_12 = arith.constant 0 : index
    %c0_13 = arith.constant 0 : index
    %15 = vector.load %arg6[%c0_12, %c0_13] : memref<512x128xf32, #tpu.memory_space<vmem>>, vector<512x128xf32>
    %cst_14 = arith.constant dense<0.000000e+00> : vector<8x128xf32>
    %16 = tpu.matmul %14, %15, %cst_14 {dimension_numbers = #tpu.dot_dimension_numbers<[1], [0], [0], [1], [0, 0, 1, 1], [], []>} : vector<8x512xf32>, vector<512x128xf32>, vector<8x128xf32> -> vector<8x128xf32>
    %c0_15 = arith.constant 0 : index
    %c0_16 = arith.constant 0 : index
    %17 = vector.load %arg7[%c0_15, %c0_16] : memref<1x128xf32, #tpu.memory_space<vmem>>, vector<1x128xf32>
    %18 = vector.broadcast %17 : vector<1x128xf32> to vector<8x128xf32>
    %19 = arith.addf %16, %18 : vector<8x128xf32>
    %c0_17 = arith.constant 0 : index
    %c0_18 = arith.constant 0 : index
    %20 = vector.load %arg8[%c0_17, %c0_18] : memref<8x128xf32, #tpu.memory_space<vmem>>, vector<8x128xf32>
    tpu.vector_store %arg8[%c0_17, %c0_18], %19 {strides = array<i32>} : memref<8x128xf32, #tpu.memory_space<vmem>>, vector<8x128xf32>,
    return
  }
  func.func @transform_0(%arg0: i32) -> (i32, i32) {
    %c0_i32 = arith.constant 0 : i32
    %c0_i32_0 = arith.constant 0 : i32
    return %arg0, %c0_i32 : i32, i32
  }
  func.func @transform_1(%arg0: i32) -> (i32, i32) {
    %c0_i32 = arith.constant 0 : i32
    %c0_i32_0 = arith.constant 0 : i32
    %c0_i32_1 = arith.constant 0 : i32
    return %c0_i32, %c0_i32_0 : i32, i32
  }
  func.func @transform_2(%arg0: i32) -> (i32, i32) {
    %c0_i32 = arith.constant 0 : i32
    %c0_i32_0 = arith.constant 0 : i32
    %c0_i32_1 = arith.constant 0 : i32
    return %c0_i32, %c0_i32_0 : i32, i32
  }
  func.func @transform_3(%arg0: i32) -> (i32, i32) {
    %c0_i32 = arith.constant 0 : i32
    %c0_i32_0 = arith.constant 0 : i32
    %c0_i32_1 = arith.constant 0 : i32
    return %c0_i32, %c0_i32_0 : i32, i32
  }
  func.func @transform_4(%arg0: i32) -> (i32, i32) {
    %c0_i32 = arith.constant 0 : i32
    %c0_i32_0 = arith.constant 0 : i32
    %c0_i32_1 = arith.constant 0 : i32
    return %c0_i32, %c0_i32_0 : i32, i32
  }
  func.func @transform_5(%arg0: i32) -> (i32, i32) {
    %c0_i32 = arith.constant 0 : i32
    %c0_i32_0 = arith.constant 0 : i32
    %c0_i32_1 = arith.constant 0 : i32
    return %c0_i32, %c0_i32_0 : i32, i32
  }
  func.func @transform_6(%arg0: i32) -> (i32, i32) {
    %c0_i32 = arith.constant 0 : i32
    %c0_i32_0 = arith.constant 0 : i32
    %c0_i32_1 = arith.constant 0 : i32
    return %c0_i32, %c0_i32_0 : i32, i32
  }
  func.func @transform_7(%arg0: i32) -> (i32, i32) {
    %c0_i32 = arith.constant 0 : i32
    %c0_i32_0 = arith.constant 0 : i32
    return %arg0, %c0_i32 : i32, i32
  }
}

</mosaic_0001>

<bundles_post_ra>
// kernel: tpu_custom_call.1
= control target key start
LH: loop header
LB: loop body
LE: loop exit
PB: predicated region body
PF: predicated region fallthrough
CT: control target
= control target key end

     0   :  { %12 = vsyncpa [#allocation3], 0  ;;  %s2390_s0 = inlined_call_operand.hbm [shape: f32[8,512], index: 0, kind: input, shape index: {}]   ;;  %s2391_s1 = inlined_call_operand.hbm [shape: f32[512,512], index: 1, kind: input, shape index: {}]   ;;  %s2392_s2 = inlined_call_operand.vmem [shape: f32[1,512], index: 2, kind: input, shape index: {}]   ;;  %s2393_s3 = inlined_call_operand.hbm [shape: f32[512,512], index: 3, kind: input, shape index: {}]   ;;  %s2394_s4 = inlined_call_operand.vmem [shape: f32[1,512], index: 4, kind: input, shape index: {}]   ;;  %s2395_s5 = inlined_call_operand.hbm [shape: f32[512,128], index: 5, kind: input, shape index: {}]   ;;  %s2396_s6 = inlined_call_operand.vmem [shape: f32[1,128], index: 6, kind: input, shape index: {}]   ;;  %s2397_s7 = inlined_call_operand.hbm [shape: f32[8,128], index: 7, kind: output, shape index: {}]  }
   0x1   :  { %13 = vsyncpa [#allocation6], 0 }
   0x2   :  { %14 = vsyncpa [#allocation9], 0 }
   0x3   :  { %15 = vsyncpa [#allocation4], 0  ;;  %s2235_s24 = smov [#allocation5]   ;;  %s2117_s28 = scalar_lea.hbm %s2391_s1, 32768 }
   0x4   :  { %s31_s25 = sshll.u32 %s2235_s24, 4  ;;  %p2118_p0 = scmp.ne.s32.totalorder %s2391_s1, %s2117_s28  ;;  %s32_s25 = int_to_ptr.vmem [resolvable:$true] %s31_s25 }
   0x5   :  { %p2121_p1 = scmp.lt.u32.totalorder %s2117_s28, %s2391_s1 }
   0x7   :  { %p2123_p2 = pnand %p2121_p1, %p2118_p0 }
   0x9   :  { %2126 = shalt.err (!%p2123_p2)
}
   0xa   :  { %s2127_s10 = scalar_lea.vmem %s32_s25, 32768  ;;  %p2132_p4 = scmp.lt.s32.totalorder %s32_s25, %s32_s25 }
   0xb   :  { %p2128_p3 = scmp.ne.s32.totalorder %s32_s25, %s2127_s10  ;;  %p2133_p5 = scmp.lt.s32.totalorder %s2127_s10, %s2127_s10 }
   0xd   :  { %p2134_p6 = por %p2133_p5, %p2132_p4 }
   0xf   :  { %p2135_p7 = pnand %p2134_p6, %p2128_p3 }
  0x11   :  { %2138 = shalt.err (!%p2135_p7)
}
  0x12   :  { %s2236_s11 = smov 512   ;;  %s2237_s12 = smov 32  }
  0x13   :  { %37 = dma.hbm_to_vmem [thread:$0]  %s2391_s1, 32768, %s32_s25, [#allocation6], %s2236_s11, %s2236_s11, %s2237_s12  }
  0x14   :  { %s2238_s15 = smov [#allocation2]   ;;  %s2239_s17 = smov [#allocation7]  }
  0x15   :  { %s22_s16 = sshll.u32 %s2238_s15, 4  ;;  %s45_s18 = sshll.u32 %s2239_s17, 4  ;;  %s23_s16 = int_to_ptr.vmem [resolvable:$true] %s22_s16  ;;  %s46_s18 = int_to_ptr.vmem [resolvable:$true] %s45_s18 }
  0x16   :  { %s2139_s21 = scalar_lea.hbm %s2390_s0, 512 }
  0x17   :  { %p2140_p8 = scmp.ne.s32.totalorder %s2390_s0, %s2139_s21  ;;  %p2143_p9 = scmp.lt.u32.totalorder %s2139_s21, %s2390_s0 }
  0x19   :  { %p2145_p10 = pnand %p2143_p9, %p2140_p8 }
  0x1b   :  { %2148 = shalt.err (!%p2145_p10)
}
  0x1c   :  { %s2149_s1 = scalar_lea.vmem %s23_s16, 512  ;;  %p2154_p12 = scmp.lt.s32.totalorder %s23_s16, %s23_s16 }
  0x1d   :  { %p2150_p11 = scmp.ne.s32.totalorder %s23_s16, %s2149_s1  ;;  %p2155_p13 = scmp.lt.s32.totalorder %s2149_s1, %s2149_s1 }
  0x1f   :  { %p2156_p0 = por %p2155_p13, %p2154_p12 }
  0x21   :  { %p2157_p1 = pnand %p2156_p0, %p2150_p11 }
  0x23   :  { %2160 = shalt.err (!%p2157_p1)
}
  0x24   :  { %25 = dma.hbm_to_vmem [thread:$0]  %s2390_s0, 512, %s23_s16, [#allocation3]  }
  0x25   :  { %s2161_s30 = scalar_lea.hbm %s2393_s3, 32768 }
  0x26   :  { %p2162_p2 = scmp.ne.s32.totalorder %s2393_s3, %s2161_s30  ;;  %p2165_p3 = scmp.lt.u32.totalorder %s2161_s30, %s2393_s3 }
  0x28   :  { %p2167_p4 = pnand %p2165_p3, %p2162_p2 }
  0x2a   :  { %2170 = shalt.err (!%p2167_p4)
}
  0x2b   :  { %s2171_s14 = scalar_lea.vmem %s46_s18, 32768  ;;  %p2176_p6 = scmp.lt.s32.totalorder %s46_s18, %s46_s18 }
  0x2c   :  { %p2172_p5 = scmp.ne.s32.totalorder %s46_s18, %s2171_s14  ;;  %p2177_p7 = scmp.lt.s32.totalorder %s2171_s14, %s2171_s14 }
  0x2e   :  { %p2178_p8 = por %p2177_p7, %p2176_p6 }
  0x30   :  { %p2179_p9 = pnand %p2178_p8, %p2172_p5 }
  0x32   :  { %2182 = shalt.err (!%p2179_p9)
}
  0x33   :  { %51 = dma.hbm_to_vmem [thread:$0]  %s2393_s3, 32768, %s46_s18, [#allocation6], %s2236_s11, %s2236_s11, %s2237_s12  }
  0x34   :  { %s2240_s16 = smov [#allocation8]   ;;  %s2183_s21 = scalar_lea.hbm %s2395_s5, 8192 }
  0x35   :  { %s59_s17 = sshll.u32 %s2240_s16, 4  ;;  %p2184_p10 = scmp.ne.s32.totalorder %s2395_s5, %s2183_s21  ;;  %s60_s17 = int_to_ptr.vmem [resolvable:$true] %s59_s17 }
  0x36   :  { %p2187_p11 = scmp.lt.u32.totalorder %s2183_s21, %s2395_s5 }
  0x38   :  { %p2189_p12 = pnand %p2187_p11, %p2184_p10 }
  0x3a   :  { %2192 = shalt.err (!%p2189_p12)
}
  0x3b   :  { %s2193_s1 = scalar_lea.vmem %s60_s17, 8192  ;;  %p2198_p0 = scmp.lt.s32.totalorder %s60_s17, %s60_s17 }
  0x3c   :  { %p2194_p13 = scmp.ne.s32.totalorder %s60_s17, %s2193_s1  ;;  %p2199_p1 = scmp.lt.s32.totalorder %s2193_s1, %s2193_s1 }
  0x3e   :  { %p2200_p2 = por %p2199_p1, %p2198_p0 }
  0x40   :  { %p2201_p3 = pnand %p2200_p2, %p2194_p13 }
  0x42   :  { %2204 = shalt.err (!%p2201_p3)
}
  0x43   :  { %s2241_s3 = smov 128   ;;  %s2242_s11 = smov 8  }
  0x44   :  { %65 = dma.hbm_to_vmem [thread:$0]  %s2395_s5, 8192, %s60_s17, [#allocation9], %s2241_s3, %s2241_s3, %s2242_s11  }
  0x45   :  { %2227 = dma.done.wait [#allocation3], 512  }
  0x46   :  { %2228 = vsyncadd [#allocation3], 4294966784 }
  0x47   :  { %2229 = dma.done.wait [#allocation6], 65536  }
  0x48   :  { %2230 = vsyncadd [#allocation6], 4294901760 }
  0x49   :  { %2231 = dma.done.wait [#allocation9], 8192  }
  0x4a   :  { %2232 = vsyncadd [#allocation9], 4294959104  ;;  %v85_v0 = vld [vmem:[#allocation5 + $0x8] sm:$0xff]  ;;  %v87_v2 = vld [vmem:[#allocation5 + $0x18] sm:$0xff]  ;;  %s2243_s29 = smov [#allocation10]  }
  0x4b   :  { %v89_v1 = vld [vmem:[#allocation5 + $0x28] sm:$0xff]  ;;  %v91_v4 = vld [vmem:[#allocation5 + $0x38] sm:$0xff]  ;;  %v84_v5 = vld [vmem:[#allocation5] sm:$0xff]  ;;  %s1434_s30 = sshll.u32 %s2243_s29, 4  ;;  %s1435_s30 = int_to_ptr.vmem [resolvable:$true] %s1434_s30 }
  0x4c   :  { %v1516_v3 = vpack.c.bf16 %v89_v1, %v85_v0  ;;  %v88_v6 = vld [vmem:[#allocation5 + $0x20] sm:$0xff]  ;;  %v1644_v7 = vpack.c.bf16 %v91_v4, %v87_v2  ;;  %v86_v9 = vld [vmem:[#allocation5 + $0x10] sm:$0xff]  ;;  %v93_v11 = vld [vmem:[#allocation5 + $0x48] sm:$0xff]  ;;  %s2205_s8 = scalar_lea.vmem %s1435_s30, 128  ;;  %p2210_p5 = scmp.lt.s32.totalorder %s1435_s30, %s1435_s30 }
  0x4d   :  { %v1518_v8 = vpack.c.bf16 %v88_v6, %v84_v5  ;;  %v90_v10 = vld [vmem:[#allocation5 + $0x30] sm:$0xff]  ;;  %v97_v13 = vld [vmem:[#allocation5 + $0x68] sm:$0xff]  ;;  %v95_v14 = vld [vmem:[#allocation5 + $0x58] sm:$0xff]  ;;  %p2206_p4 = scmp.ne.s32.totalorder %s1435_s30, %s2205_s8  ;;  %p2211_p6 = scmp.lt.s32.totalorder %s2205_s8, %s2205_s8 }
  0x4e   :  { %1517 = vmatprep.subr.bf16.mxu0 %v1516_v3  ;;  %v1646_v12 = vpack.c.bf16 %v90_v10, %v86_v9  ;;  %v99_v15 = vld [vmem:[#allocation5 + $0x78] sm:$0xff]  ;;  %1645 = vmatprep.subr.bf16.mxu1 %v1644_v7  ;;  %v1520_v16 = vpack.c.bf16 %v97_v13, %v93_v11  ;;  %v92_v18 = vld [vmem:[#allocation5 + $0x40] sm:$0xff]  ;;  %v94_v20 = vld [vmem:[#allocation5 + $0x50] sm:$0xff] }
  0x4f   :  { %1519 = vmatpush1.bf16.msra.mxu0 %v1518_v8  ;;  %v1648_v17 = vpack.c.bf16 %v99_v15, %v95_v14  ;;  %v96_v19 = vld [vmem:[#allocation5 + $0x60] sm:$0xff]  ;;  %v98_v22 = vld [vmem:[#allocation5 + $0x70] sm:$0xff]  ;;  %v101_v23 = vld [vmem:[#allocation5 + $0x88] sm:$0xff]  ;;  %p2212_p7 = por %p2211_p6, %p2210_p5 }
  0x50   :  { %1647 = vmatpush1.bf16.msra.mxu1 %v1646_v12  ;;  %v1522_v21 = vpack.c.bf16 %v96_v19, %v92_v18  ;;  %v105_v24 = vld [vmem:[#allocation5 + $0xa8] sm:$0xff]  ;;  %1521 = vmatprep.subr.bf16.mxu0 %v1520_v16  ;;  %v1650_v25 = vpack.c.bf16 %v98_v22, %v94_v20  ;;  %v103_v27 = vld [vmem:[#allocation5 + $0x98] sm:$0xff]  ;;  %v100_v29 = vld [vmem:[#allocation5 + $0x80] sm:$0xff] }
  0x51   :  { %1649 = vmatprep.subr.bf16.mxu1 %v1648_v17  ;;  %v1524_v26 = vpack.c.bf16 %v105_v24, %v101_v23  ;;  %v107_v28 = vld [vmem:[#allocation5 + $0xb8] sm:$0xff]  ;;  %v104_v31 = vld [vmem:[#allocation5 + $0xa0] sm:$0xff]  ;;  %v102_v32 = vld [vmem:[#allocation5 + $0x90] sm:$0xff]  ;;  %p2213_p8 = pnand %p2212_p7, %p2206_p4 }
  0x52   :  { %v1652_v30 = vpack.c.bf16 %v107_v28, %v103_v27  ;;  %v106_v33 = vld [vmem:[#allocation5 + $0xb0] sm:$0xff]  ;;  %v1526_v34 = vpack.c.bf16 %v104_v31, %v100_v29  ;;  %v109_v35 = vld [vmem:[#allocation5 + $0xc8] sm:$0xff]  ;;  %v111_v37 = vld [vmem:[#allocation5 + $0xd8] sm:$0xff] }
  0x53   :  { %1523 = vmatpush1.bf16.msra.mxu0 %v1522_v21  ;;  %v113_v36 = vld [vmem:[#allocation5 + $0xe8] sm:$0xff]  ;;  %v1654_v38 = vpack.c.bf16 %v106_v33, %v102_v32  ;;  %v115_v40 = vld [vmem:[#allocation5 + $0xf8] sm:$0xff]  ;;  %v108_v41 = vld [vmem:[#allocation5 + $0xc0] sm:$0xff] }
  0x54   :  { %1651 = vmatpush1.bf16.msra.mxu1 %v1650_v25  ;;  %1525 = vmatprep.subr.bf16.mxu0 %v1524_v26  ;;  %v1528_v39 = vpack.c.bf16 %v113_v36, %v109_v35  ;;  %v112_v42 = vld [vmem:[#allocation5 + $0xe0] sm:$0xff]  ;;  %v1656_v43 = vpack.c.bf16 %v115_v40, %v111_v37  ;;  %v110_v44 = vld [vmem:[#allocation5 + $0xd0] sm:$0xff]  ;;  %v117_v46 = vld [vmem:[#allocation5 + $0x108] sm:$0xff] }
  0x55   :  { %1653 = vmatprep.subr.bf16.mxu1 %v1652_v30  ;;  %v114_v45 = vld [vmem:[#allocation5 + $0xf0] sm:$0xff]  ;;  %v121_v47 = vld [vmem:[#allocation5 + $0x128] sm:$0xff]  ;;  %v119_v48 = vld [vmem:[#allocation5 + $0x118] sm:$0xff]  ;;  %v1530_v50 = vpack.c.bf16 %v112_v42, %v108_v41 }
  0x56   :  { %v123_v49 = vld [vmem:[#allocation5 + $0x138] sm:$0xff]  ;;  %v1658_v51 = vpack.c.bf16 %v114_v45, %v110_v44  ;;  %v1532_v52 = vpack.c.bf16 %v121_v47, %v117_v46  ;;  %v116_v53 = vld [vmem:[#allocation5 + $0x100] sm:$0xff]  ;;  %v118_v55 = vld [vmem:[#allocation5 + $0x110] sm:$0xff] }
  0x57   :  { %1527 = vmatpush1.bf16.msra.mxu0 %v1526_v34  ;;  %v120_v54 = vld [vmem:[#allocation5 + $0x120] sm:$0xff]  ;;  %v1660_v56 = vpack.c.bf16 %v123_v49, %v119_v48  ;;  %v122_v57 = vld [vmem:[#allocation5 + $0x130] sm:$0xff]  ;;  %v125_v58 = vld [vmem:[#allocation5 + $0x148] sm:$0xff] }
  0x58   :  { %1655 = vmatpush1.bf16.msra.mxu1 %v1654_v38  ;;  %1529 = vmatprep.subr.bf16.mxu0 %v1528_v39  ;;  %v129_v59 = vld [vmem:[#allocation5 + $0x168] sm:$0xff]  ;;  %v127_v60 = vld [vmem:[#allocation5 + $0x158] sm:$0xff]  ;;  %v1534_v62 = vpack.c.bf16 %v120_v54, %v116_v53  ;;  %v1662_v63 = vpack.c.bf16 %v122_v57, %v118_v55  ;;  %v124_v1 = vld [vmem:[#allocation5 + $0x140] sm:$0xff] }
  0x59   :  { %1657 = vmatprep.subr.bf16.mxu1 %v1656_v43  ;;  %v131_v61 = vld [vmem:[#allocation5 + $0x178] sm:$0xff]  ;;  %v1536_v0 = vpack.c.bf16 %v129_v59, %v125_v58  ;;  %v128_v2 = vld [vmem:[#allocation5 + $0x160] sm:$0xff]  ;;  %v126_v3 = vld [vmem:[#allocation5 + $0x150] sm:$0xff] }
  0x5a   :  { %v1664_v4 = vpack.c.bf16 %v131_v61, %v127_v60  ;;  %v130_v5 = vld [vmem:[#allocation5 + $0x170] sm:$0xff]  ;;  %v133_v6 = vld [vmem:[#allocation5 + $0x188] sm:$0xff]  ;;  %v135_v8 = vld [vmem:[#allocation5 + $0x198] sm:$0xff]  ;;  %v1538_v10 = vpack.c.bf16 %v128_v2, %v124_v1 }
  0x5b   :  { %1531 = vmatpush1.bf16.msra.mxu0 %v1530_v50  ;;  %v137_v7 = vld [vmem:[#allocation5 + $0x1a8] sm:$0xff]  ;;  %v139_v9 = vld [vmem:[#allocation5 + $0x1b8] sm:$0xff]  ;;  %v1666_v11 = vpack.c.bf16 %v130_v5, %v126_v3  ;;  %v132_v13 = vld [vmem:[#allocation5 + $0x180] sm:$0xff] }
  0x5c   :  { %1659 = vmatpush1.bf16.msra.mxu1 %v1658_v51  ;;  %1533 = vmatprep.subr.bf16.mxu0 %v1532_v52  ;;  %v1540_v12 = vpack.c.bf16 %v137_v7, %v133_v6  ;;  %v136_v14 = vld [vmem:[#allocation5 + $0x1a0] sm:$0xff]  ;;  %v134_v15 = vld [vmem:[#allocation5 + $0x190] sm:$0xff]  ;;  %v1668_v16 = vpack.c.bf16 %v139_v9, %v135_v8  ;;  %v141_v18 = vld [vmem:[#allocation5 + $0x1c8] sm:$0xff] }
  0x5d   :  { %1661 = vmatprep.subr.bf16.mxu1 %v1660_v56  ;;  %v138_v17 = vld [vmem:[#allocation5 + $0x1b0] sm:$0xff]  ;;  %v145_v19 = vld [vmem:[#allocation5 + $0x1e8] sm:$0xff]  ;;  %v143_v20 = vld [vmem:[#allocation5 + $0x1d8] sm:$0xff]  ;;  %v1542_v22 = vpack.c.bf16 %v136_v14, %v132_v13 }
  0x5e   :  { %v147_v21 = vld [vmem:[#allocation5 + $0x1f8] sm:$0xff]  ;;  %v1670_v23 = vpack.c.bf16 %v138_v17, %v134_v15  ;;  %v1544_v24 = vpack.c.bf16 %v145_v19, %v141_v18  ;;  %v140_v25 = vld [vmem:[#allocation5 + $0x1c0] sm:$0xff]  ;;  %v142_v27 = vld [vmem:[#allocation5 + $0x1d0] sm:$0xff] }
  0x5f   :  { %1535 = vmatpush1.bf16.msra.mxu0 %v1534_v62  ;;  %v144_v26 = vld [vmem:[#allocation5 + $0x1e0] sm:$0xff]  ;;  %v1672_v28 = vpack.c.bf16 %v147_v21, %v143_v20  ;;  %v146_v29 = vld [vmem:[#allocation5 + $0x1f0] sm:$0xff]  ;;  %v149_v30 = vld [vmem:[#allocation5 + $0x208] sm:$0xff] }
  0x60   :  { %1663 = vmatpush1.bf16.msra.mxu1 %v1662_v63  ;;  %1537 = vmatprep.subr.bf16.mxu0 %v1536_v0  ;;  %v153_v31 = vld [vmem:[#allocation5 + $0x228] sm:$0xff]  ;;  %v151_v32 = vld [vmem:[#allocation5 + $0x218] sm:$0xff]  ;;  %v1546_v34 = vpack.c.bf16 %v144_v26, %v140_v25  ;;  %v1674_v35 = vpack.c.bf16 %v146_v29, %v142_v27  ;;  %v148_v37 = vld [vmem:[#allocation5 + $0x200] sm:$0xff] }
  0x61   :  { %1665 = vmatprep.subr.bf16.mxu1 %v1664_v4  ;;  %v155_v33 = vld [vmem:[#allocation5 + $0x238] sm:$0xff]  ;;  %v1548_v36 = vpack.c.bf16 %v153_v31, %v149_v30  ;;  %v152_v38 = vld [vmem:[#allocation5 + $0x220] sm:$0xff]  ;;  %v150_v39 = vld [vmem:[#allocation5 + $0x210] sm:$0xff] }
  0x62   :  { %v1676_v40 = vpack.c.bf16 %v155_v33, %v151_v32  ;;  %v154_v41 = vld [vmem:[#allocation5 + $0x230] sm:$0xff]  ;;  %v157_v42 = vld [vmem:[#allocation5 + $0x248] sm:$0xff]  ;;  %v159_v44 = vld [vmem:[#allocation5 + $0x258] sm:$0xff]  ;;  %v1550_v46 = vpack.c.bf16 %v152_v38, %v148_v37 }
  0x63   :  { %1539 = vmatpush1.bf16.msra.mxu0 %v1538_v10  ;;  %v161_v43 = vld [vmem:[#allocation5 + $0x268] sm:$0xff]  ;;  %v163_v45 = vld [vmem:[#allocation5 + $0x278] sm:$0xff]  ;;  %v1678_v47 = vpack.c.bf16 %v154_v41, %v150_v39  ;;  %v156_v49 = vld [vmem:[#allocation5 + $0x240] sm:$0xff] }
  0x64   :  { %1667 = vmatpush1.bf16.msra.mxu1 %v1666_v11  ;;  %1541 = vmatprep.subr.bf16.mxu0 %v1540_v12  ;;  %v1552_v48 = vpack.c.bf16 %v161_v43, %v157_v42  ;;  %v160_v50 = vld [vmem:[#allocation5 + $0x260] sm:$0xff]  ;;  %v158_v51 = vld [vmem:[#allocation5 + $0x250] sm:$0xff]  ;;  %v1680_v52 = vpack.c.bf16 %v163_v45, %v159_v44  ;;  %v165_v54 = vld [vmem:[#allocation5 + $0x288] sm:$0xff] }
  0x65   :  { %1669 = vmatprep.subr.bf16.mxu1 %v1668_v16  ;;  %v162_v53 = vld [vmem:[#allocation5 + $0x270] sm:$0xff]  ;;  %v169_v55 = vld [vmem:[#allocation5 + $0x2a8] sm:$0xff]  ;;  %v167_v56 = vld [vmem:[#allocation5 + $0x298] sm:$0xff]  ;;  %v1554_v58 = vpack.c.bf16 %v160_v50, %v156_v49 }
  0x66   :  { %v171_v57 = vld [vmem:[#allocation5 + $0x2b8] sm:$0xff]  ;;  %v1682_v59 = vpack.c.bf16 %v162_v53, %v158_v51  ;;  %v1556_v60 = vpack.c.bf16 %v169_v55, %v165_v54  ;;  %v164_v61 = vld [vmem:[#allocation5 + $0x280] sm:$0xff]  ;;  %v166_v63 = vld [vmem:[#allocation5 + $0x290] sm:$0xff] }
  0x67   :  { %1543 = vmatpush1.bf16.msra.mxu0 %v1542_v22  ;;  %v168_v62 = vld [vmem:[#allocation5 + $0x2a0] sm:$0xff]  ;;  %v1684_v0 = vpack.c.bf16 %v171_v57, %v167_v56  ;;  %v170_v1 = vld [vmem:[#allocation5 + $0x2b0] sm:$0xff]  ;;  %v173_v2 = vld [vmem:[#allocation5 + $0x2c8] sm:$0xff] }
  0x68   :  { %1671 = vmatpush1.bf16.msra.mxu1 %v1670_v23  ;;  %1545 = vmatprep.subr.bf16.mxu0 %v1544_v24  ;;  %v177_v3 = vld [vmem:[#allocation5 + $0x2e8] sm:$0xff]  ;;  %v175_v4 = vld [vmem:[#allocation5 + $0x2d8] sm:$0xff]  ;;  %v1558_v6 = vpack.c.bf16 %v168_v62, %v164_v61  ;;  %v172_v7 = vld [vmem:[#allocation5 + $0x2c0] sm:$0xff]  ;;  %v1686_v8 = vpack.c.bf16 %v170_v1, %v166_v63 }
  0x69   :  { %1673 = vmatprep.subr.bf16.mxu1 %v1672_v28  ;;  %v179_v5 = vld [vmem:[#allocation5 + $0x2f8] sm:$0xff]  ;;  %v1560_v9 = vpack.c.bf16 %v177_v3, %v173_v2  ;;  %v176_v10 = vld [vmem:[#allocation5 + $0x2e0] sm:$0xff]  ;;  %v174_v11 = vld [vmem:[#allocation5 + $0x2d0] sm:$0xff] }
  0x6a   :  { %v178_v12 = vld [vmem:[#allocation5 + $0x2f0] sm:$0xff]  ;;  %v1688_v13 = vpack.c.bf16 %v179_v5, %v175_v4  ;;  %v181_v14 = vld [vmem:[#allocation5 + $0x308] sm:$0xff]  ;;  %v183_v17 = vld [vmem:[#allocation5 + $0x318] sm:$0xff]  ;;  %v1562_v19 = vpack.c.bf16 %v176_v10, %v172_v7 }
  0x6b   :  { %1547 = vmatpush1.bf16.msra.mxu0 %v1546_v34  ;;  %v185_v15 = vld [vmem:[#allocation5 + $0x328] sm:$0xff]  ;;  %v187_v18 = vld [vmem:[#allocation5 + $0x338] sm:$0xff]  ;;  %v1690_v20 = vpack.c.bf16 %v178_v12, %v174_v11  ;;  %v180_v22 = vld [vmem:[#allocation5 + $0x300] sm:$0xff] }
  0x6c   :  { %1675 = vmatpush1.bf16.msra.mxu1 %v1674_v35  ;;  %1549 = vmatprep.subr.bf16.mxu0 %v1548_v36  ;;  %v81_v16 = vld [vmem:[#allocation2 + $0x8] sm:$0xff]  ;;  %v1564_v21 = vpack.c.bf16 %v185_v15, %v181_v14  ;;  %v184_v23 = vld [vmem:[#allocation5 + $0x320] sm:$0xff]  ;;  %v182_v24 = vld [vmem:[#allocation5 + $0x310] sm:$0xff]  ;;  %v1692_v25 = vpack.c.bf16 %v187_v18, %v183_v17 }
  0x6d   :  { %1677 = vmatprep.subr.bf16.mxu1 %v1676_v40  ;;  %426 = vmatprep.mubr.f32.mxu0 %v81_v16  ;;  %v186_v26 = vld [vmem:[#allocation5 + $0x330] sm:$0xff]  ;;  %v189_v27 = vld [vmem:[#allocation5 + $0x348] sm:$0xff]  ;;  %v191_v29 = vld [vmem:[#allocation5 + $0x358] sm:$0xff]  ;;  %v1566_v31 = vpack.c.bf16 %v184_v23, %v180_v22 }
  0x6e   :  { %568 = vmatprep.mubr.f32.mxu1 %v81_v16  ;;  %v193_v28 = vld [vmem:[#allocation5 + $0x368] sm:$0xff]  ;;  %v195_v30 = vld [vmem:[#allocation5 + $0x378] sm:$0xff]  ;;  %v1694_v32 = vpack.c.bf16 %v186_v26, %v182_v24  ;;  %v188_v34 = vld [vmem:[#allocation5 + $0x340] sm:$0xff] }
  0x6f   :  { %1551 = vmatpush1.bf16.msra.mxu0 %v1550_v46  ;;  %v1568_v33 = vpack.c.bf16 %v193_v28, %v189_v27  ;;  %v192_v35 = vld [vmem:[#allocation5 + $0x360] sm:$0xff]  ;;  %v190_v36 = vld [vmem:[#allocation5 + $0x350] sm:$0xff]  ;;  %v1696_v37 = vpack.c.bf16 %v195_v30, %v191_v29  ;;  %v197_v39 = vld [vmem:[#allocation5 + $0x388] sm:$0xff] }
  0x70   :  { %1679 = vmatpush1.bf16.msra.mxu1 %v1678_v47  ;;  %1553 = vmatprep.subr.bf16.mxu0 %v1552_v48  ;;  %v194_v38 = vld [vmem:[#allocation5 + $0x370] sm:$0xff]  ;;  %v201_v40 = vld [vmem:[#allocation5 + $0x3a8] sm:$0xff]  ;;  %v199_v41 = vld [vmem:[#allocation5 + $0x398] sm:$0xff]  ;;  %v1570_v43 = vpack.c.bf16 %v192_v35, %v188_v34 }
  0x71   :  { %1681 = vmatprep.subr.bf16.mxu1 %v1680_v52  ;;  %v203_v42 = vld [vmem:[#allocation5 + $0x3b8] sm:$0xff]  ;;  %v1698_v44 = vpack.c.bf16 %v194_v38, %v190_v36  ;;  %v1572_v45 = vpack.c.bf16 %v201_v40, %v197_v39  ;;  %v196_v46 = vld [vmem:[#allocation5 + $0x380] sm:$0xff]  ;;  %v198_v48 = vld [vmem:[#allocation5 + $0x390] sm:$0xff] }
  0x72   :  { %v200_v47 = vld [vmem:[#allocation5 + $0x3a0] sm:$0xff]  ;;  %v1700_v49 = vpack.c.bf16 %v203_v42, %v199_v41  ;;  %v202_v50 = vld [vmem:[#allocation5 + $0x3b0] sm:$0xff]  ;;  %v205_v51 = vld [vmem:[#allocation5 + $0x3c8] sm:$0xff] }
  0x73   :  { %1555 = vmatpush1.bf16.msra.mxu0 %v1554_v58  ;;  %v209_v52 = vld [vmem:[#allocation5 + $0x3e8] sm:$0xff]  ;;  %v207_v53 = vld [vmem:[#allocation5 + $0x3d8] sm:$0xff]  ;;  %v1574_v55 = vpack.c.bf16 %v200_v47, %v196_v46  ;;  %v1702_v56 = vpack.c.bf16 %v202_v50, %v198_v48  ;;  %v204_v58 = vld [vmem:[#allocation5 + $0x3c0] sm:$0xff] }
  0x74   :  { %1683 = vmatpush1.bf16.msra.mxu1 %v1682_v59  ;;  %1557 = vmatprep.subr.bf16.mxu0 %v1556_v60  ;;  %v211_v54 = vld [vmem:[#allocation5 + $0x3f8] sm:$0xff]  ;;  %v1576_v57 = vpack.c.bf16 %v209_v52, %v205_v51  ;;  %v208_v59 = vld [vmem:[#allocation5 + $0x3e0] sm:$0xff]  ;;  %v206_v60 = vld [vmem:[#allocation5 + $0x3d0] sm:$0xff] }
  0x75   :  { %1685 = vmatprep.subr.bf16.mxu1 %v1684_v0  ;;  %v1704_v61 = vpack.c.bf16 %v211_v54, %v207_v53  ;;  %v210_v62 = vld [vmem:[#allocation5 + $0x3f0] sm:$0xff]  ;;  %v213_v63 = vld [vmem:[#allocation5 + $0x408] sm:$0xff]  ;;  %v215_v1 = vld [vmem:[#allocation5 + $0x418] sm:$0xff]  ;;  %v1578_v3 = vpack.c.bf16 %v208_v59, %v204_v58 }
  0x76   :  { %v217_v0 = vld [vmem:[#allocation5 + $0x428] sm:$0xff]  ;;  %v219_v2 = vld [vmem:[#allocation5 + $0x438] sm:$0xff]  ;;  %v1706_v4 = vpack.c.bf16 %v210_v62, %v206_v60  ;;  %v216_v7 = vld [vmem:[#allocation5 + $0x420] sm:$0xff] }
  0x77   :  { %1559 = vmatpush1.bf16.msra.mxu0 %v1558_v6  ;;  %v1580_v5 = vpack.c.bf16 %v217_v0, %v213_v63  ;;  %v212_v6 = vld [vmem:[#allocation5 + $0x400] sm:$0xff]  ;;  %v218_v10 = vld [vmem:[#allocation5 + $0x430] sm:$0xff]  ;;  %v221_v11 = vld [vmem:[#allocation5 + $0x448] sm:$0xff] }
  0x78   :  { %1687 = vmatpush1.bf16.msra.mxu1 %v1686_v8  ;;  %1561 = vmatprep.subr.bf16.mxu0 %v1560_v9  ;;  %v214_v8 = vld [vmem:[#allocation5 + $0x410] sm:$0xff]  ;;  %v1708_v9 = vpack.c.bf16 %v219_v2, %v215_v1  ;;  %v225_v12 = vld [vmem:[#allocation5 + $0x468] sm:$0xff]  ;;  %v227_v14 = vld [vmem:[#allocation5 + $0x478] sm:$0xff]  ;;  %v1582_v16 = vpack.c.bf16 %v216_v7, %v212_v6 }
  0x79   :  { %1689 = vmatprep.subr.bf16.mxu1 %v1688_v13  ;;  %v223_v13 = vld [vmem:[#allocation5 + $0x458] sm:$0xff]  ;;  %v80_v15 = vld [vmem:[#allocation2] sm:$0xff]  ;;  %v1710_v17 = vpack.c.bf16 %v218_v10, %v214_v8  ;;  %v1584_v18 = vpack.c.bf16 %v225_v12, %v221_v11  ;;  %v226_v23 = vld [vmem:[#allocation5 + $0x470] sm:$0xff] }
  0x7a   :  { %v1712_v22 = vpack.c.bf16 %v227_v14, %v223_v13  ;;  %v229_v24 = vld [vmem:[#allocation5 + $0x488] sm:$0xff]  ;;  %v231_v26 = vld [vmem:[#allocation5 + $0x498] sm:$0xff]  ;;  %v234_v35 = vld [vmem:[#allocation5 + $0x4b0] sm:$0xff] }
  0x7b   :  { %1563 = vmatpush1.bf16.msra.mxu0 %v1562_v19  ;;  %v220_v19 = vld [vmem:[#allocation5 + $0x440] sm:$0xff]  ;;  %v235_v27 = vld [vmem:[#allocation5 + $0x4b8] sm:$0xff]  ;;  %v237_v36 = vld [vmem:[#allocation5 + $0x4c8] sm:$0xff] }
  0x7c   :  { %1691 = vmatpush1.bf16.msra.mxu1 %v1690_v20  ;;  %1565 = vmatprep.subr.bf16.mxu0 %v1564_v21  ;;  %v224_v20 = vld [vmem:[#allocation5 + $0x460] sm:$0xff]  ;;  %v222_v21 = vld [vmem:[#allocation5 + $0x450] sm:$0xff]  ;;  %v1716_v34 = vpack.c.bf16 %v235_v27, %v231_v26  ;;  %v239_v38 = vld [vmem:[#allocation5 + $0x4d8] sm:$0xff] }
  0x7d   :  { %1693 = vmatprep.subr.bf16.mxu1 %v1692_v25  ;;  %v233_v25 = vld [vmem:[#allocation5 + $0x4a8] sm:$0xff]  ;;  %v1586_v28 = vpack.c.bf16 %v224_v20, %v220_v19  ;;  %v1714_v29 = vpack.c.bf16 %v226_v23, %v222_v21  ;;  %v243_v39 = vld [vmem:[#allocation5 + $0x4f8] sm:$0xff]  ;;  %v242_v47 = vld [vmem:[#allocation5 + $0x4f0] sm:$0xff] }
  0x7e   :  { %v1588_v30 = vpack.c.bf16 %v233_v25, %v229_v24  ;;  %v1720_v46 = vpack.c.bf16 %v243_v39, %v239_v38  ;;  %v245_v48 = vld [vmem:[#allocation5 + $0x508] sm:$0xff]  ;;  %v247_v50 = vld [vmem:[#allocation5 + $0x518] sm:$0xff]  ;;  %v250_v59 = vld [vmem:[#allocation5 + $0x530] sm:$0xff] }
  0x7f   :  { %1567 = vmatpush1.bf16.msra.mxu0 %v1566_v31  ;;  %v228_v31 = vld [vmem:[#allocation5 + $0x480] sm:$0xff]  ;;  %v251_v51 = vld [vmem:[#allocation5 + $0x538] sm:$0xff]  ;;  %v253_v60 = vld [vmem:[#allocation5 + $0x548] sm:$0xff] }
  0x80   :  { %1695 = vmatpush1.bf16.msra.mxu1 %v1694_v32  ;;  %1569 = vmatprep.subr.bf16.mxu0 %v1568_v33  ;;  %v232_v32 = vld [vmem:[#allocation5 + $0x4a0] sm:$0xff]  ;;  %v230_v33 = vld [vmem:[#allocation5 + $0x490] sm:$0xff]  ;;  %v1724_v58 = vpack.c.bf16 %v251_v51, %v247_v50  ;;  %v255_v62 = vld [vmem:[#allocation5 + $0x558] sm:$0xff] }
  0x81   :  { %1697 = vmatprep.subr.bf16.mxu1 %v1696_v37  ;;  %v241_v37 = vld [vmem:[#allocation5 + $0x4e8] sm:$0xff]  ;;  %v1590_v40 = vpack.c.bf16 %v232_v32, %v228_v31  ;;  %v1718_v41 = vpack.c.bf16 %v234_v35, %v230_v33  ;;  %v259_v63 = vld [vmem:[#allocation5 + $0x578] sm:$0xff]  ;;  %v258_v7 = vld [vmem:[#allocation5 + $0x570] sm:$0xff] }
  0x82   :  { %v1592_v42 = vpack.c.bf16 %v241_v37, %v237_v36  ;;  %v1728_v6 = vpack.c.bf16 %v259_v63, %v255_v62  ;;  %v261_v8 = vld [vmem:[#allocation5 + $0x588] sm:$0xff]  ;;  %v263_v10 = vld [vmem:[#allocation5 + $0x598] sm:$0xff]  ;;  %v260_v13 = vld [vmem:[#allocation5 + $0x580] sm:$0xff] }
  0x83   :  { %1571 = vmatpush1.bf16.msra.mxu0 %v1570_v43  ;;  %v236_v43 = vld [vmem:[#allocation5 + $0x4c0] sm:$0xff]  ;;  %v267_v11 = vld [vmem:[#allocation5 + $0x5b8] sm:$0xff]  ;;  %v269_v20 = vld [vmem:[#allocation5 + $0x5c8] sm:$0xff] }
  0x84   :  { %1699 = vmatpush1.bf16.msra.mxu1 %v1698_v44  ;;  %1573 = vmatprep.subr.bf16.mxu0 %v1572_v45  ;;  %v240_v44 = vld [vmem:[#allocation5 + $0x4e0] sm:$0xff]  ;;  %v238_v45 = vld [vmem:[#allocation5 + $0x4d0] sm:$0xff]  ;;  %v1732_v19 = vpack.c.bf16 %v267_v11, %v263_v10  ;;  %v273_v21 = vld [vmem:[#allocation5 + $0x5e8] sm:$0xff] }
  0x85   :  { %1701 = vmatprep.subr.bf16.mxu1 %v1700_v49  ;;  %v249_v49 = vld [vmem:[#allocation5 + $0x528] sm:$0xff]  ;;  %v1594_v52 = vpack.c.bf16 %v240_v44, %v236_v43  ;;  %v1722_v53 = vpack.c.bf16 %v242_v47, %v238_v45  ;;  %v271_v23 = vld [vmem:[#allocation5 + $0x5d8] sm:$0xff]  ;;  %v1608_v27 = vpack.c.bf16 %v273_v21, %v269_v20  ;;  %v274_v32 = vld [vmem:[#allocation5 + $0x5f0] sm:$0xff] }
  0x86   :  { %v1596_v54 = vpack.c.bf16 %v249_v49, %v245_v48  ;;  %v275_v24 = vld [vmem:[#allocation5 + $0x5f8] sm:$0xff]  ;;  %v277_v33 = vld [vmem:[#allocation5 + $0x608] sm:$0xff]  ;;  %v282_v44 = vld [vmem:[#allocation5 + $0x630] sm:$0xff] }
  0x87   :  { %1575 = vmatpush1.bf16.msra.mxu0 %v1574_v55  ;;  %v244_v55 = vld [vmem:[#allocation5 + $0x500] sm:$0xff]  ;;  %v1736_v31 = vpack.c.bf16 %v275_v24, %v271_v23  ;;  %v279_v35 = vld [vmem:[#allocation5 + $0x618] sm:$0xff]  ;;  %v285_v45 = vld [vmem:[#allocation5 + $0x648] sm:$0xff] }
  0x88   :  { %1703 = vmatpush1.bf16.msra.mxu1 %v1702_v56  ;;  %1577 = vmatprep.subr.bf16.mxu0 %v1576_v57  ;;  %v248_v56 = vld [vmem:[#allocation5 + $0x520] sm:$0xff]  ;;  %v246_v57 = vld [vmem:[#allocation5 + $0x510] sm:$0xff]  ;;  %v283_v36 = vld [vmem:[#allocation5 + $0x638] sm:$0xff] }
  0x89   :  { %1705 = vmatprep.subr.bf16.mxu1 %v1704_v61  ;;  %v257_v61 = vld [vmem:[#allocation5 + $0x568] sm:$0xff]  ;;  %v1598_v0 = vpack.c.bf16 %v248_v56, %v244_v55  ;;  %v1726_v1 = vpack.c.bf16 %v250_v59, %v246_v57  ;;  %v1740_v43 = vpack.c.bf16 %v283_v36, %v279_v35  ;;  %v287_v47 = vld [vmem:[#allocation5 + $0x658] sm:$0xff]  ;;  %v290_v56 = vld [vmem:[#allocation5 + $0x670] sm:$0xff] }
  0x8a   :  { %v1600_v2 = vpack.c.bf16 %v257_v61, %v253_v60  ;;  %v291_v48 = vld [vmem:[#allocation5 + $0x678] sm:$0xff]  ;;  %v293_v57 = vld [vmem:[#allocation5 + $0x688] sm:$0xff]  ;;  %v308_v24 = vld [vmem:[#allocation5 + $0x700] sm:$0xff] }
  0x8b   :  { %1579 = vmatpush1.bf16.msra.mxu0 %v1578_v3  ;;  %v252_v3 = vld [vmem:[#allocation5 + $0x540] sm:$0xff]  ;;  %v1744_v55 = vpack.c.bf16 %v291_v48, %v287_v47  ;;  %v295_v59 = vld [vmem:[#allocation5 + $0x698] sm:$0xff] }
  0x8c   :  { %1707 = vmatpush1.bf16.msra.mxu1 %v1706_v4  ;;  %1581 = vmatprep.subr.bf16.mxu0 %v1580_v5  ;;  %v256_v4 = vld [vmem:[#allocation5 + $0x560] sm:$0xff]  ;;  %v254_v5 = vld [vmem:[#allocation5 + $0x550] sm:$0xff]  ;;  %v299_v60 = vld [vmem:[#allocation5 + $0x6b8] sm:$0xff] }
  0x8d   :  { %1709 = vmatprep.subr.bf16.mxu1 %v1708_v9  ;;  %v265_v9 = vld [vmem:[#allocation5 + $0x5a8] sm:$0xff]  ;;  %v1602_v12 = vpack.c.bf16 %v256_v4, %v252_v3  ;;  %v1730_v14 = vpack.c.bf16 %v258_v7, %v254_v5  ;;  %v1748_v3 = vpack.c.bf16 %v299_v60, %v295_v59  ;;  %v298_v4 = vld [vmem:[#allocation5 + $0x6b0] sm:$0xff]  ;;  %v303_v7 = vld [vmem:[#allocation5 + $0x6d8] sm:$0xff] }
  0x8e   :  { %427 = vmatmul.mubr.f32.vlgmr.msra.gmra.mrb[0].mxu0 %v80_v15  ;;  %v301_v5 = vld [vmem:[#allocation5 + $0x6c8] sm:$0xff]  ;;  %v315_v20 = vld [vmem:[#allocation5 + $0x738] sm:$0xff]  ;;  %v316_v36 = vld [vmem:[#allocation5 + $0x740] sm:$0xff] }
  0x8f   :  { %1583 = vmatpush1.bf16.msra.mxu0 %v1582_v16  ;;  %569 = vmatmul.mubr.f32.vlgmr.msra.gmra.mrb[0].mxu1 %v80_v15  ;;  %v1604_v15 = vpack.c.bf16 %v265_v9, %v261_v8  ;;  %v264_v16 = vld [vmem:[#allocation5 + $0x5a0] sm:$0xff]  ;;  %v307_v8 = vld [vmem:[#allocation5 + $0x6f8] sm:$0xff] }
  0x90   :  { %1711 = vmatpush1.bf16.msra.mxu1 %v1710_v17  ;;  %1585 = vmatprep.subr.bf16.mxu0 %v1584_v18  ;;  %v262_v17 = vld [vmem:[#allocation5 + $0x590] sm:$0xff]  ;;  %v1606_v25 = vpack.c.bf16 %v264_v16, %v260_v13  ;;  %v304_v13 = vld [vmem:[#allocation5 + $0x6e0] sm:$0xff] }
  0x91   :  { %1713 = vmatprep.subr.bf16.mxu1 %v1712_v22  ;;  %v266_v18 = vld [vmem:[#allocation5 + $0x5b0] sm:$0xff]  ;;  %v83_v22 = vld [vmem:[#allocation2 + $0x18] sm:$0xff]  ;;  %v324_v48 = vld [vmem:[#allocation5 + $0x780] sm:$0xff] }
  0x92   :  { %497 = vmatprep.mubr.f32.mxu0 %v83_v22  ;;  %639 = vmatprep.mubr.f32.mxu1 %v83_v22  ;;  %v1734_v26 = vpack.c.bf16 %v266_v18, %v262_v17  ;;  %v306_v16 = vld [vmem:[#allocation5 + $0x6f0] sm:$0xff]  ;;  %v309_v17 = vld [vmem:[#allocation5 + $0x708] sm:$0xff]  ;;  %v332_v60 = vld [vmem:[#allocation5 + $0x7c0] sm:$0xff] }
  0x93   :  { %1587 = vmatpush1.bf16.msra.mxu0 %v1586_v28  ;;  %v268_v28 = vld [vmem:[#allocation5 + $0x5c0] sm:$0xff]  ;;  %v313_v18 = vld [vmem:[#allocation5 + $0x728] sm:$0xff] }
  0x94   :  { %1715 = vmatpush1.bf16.msra.mxu1 %v1714_v29  ;;  %1589 = vmatprep.subr.bf16.mxu0 %v1588_v30  ;;  %v272_v29 = vld [vmem:[#allocation5 + $0x5e0] sm:$0xff]  ;;  %v270_v30 = vld [vmem:[#allocation5 + $0x5d0] sm:$0xff]  ;;  %v1628_v23 = vpack.c.bf16 %v313_v18, %v309_v17 }
  0x95   :  { %1717 = vmatprep.subr.bf16.mxu1 %v1716_v34  ;;  %v281_v34 = vld [vmem:[#allocation5 + $0x628] sm:$0xff]  ;;  %v1610_v37 = vpack.c.bf16 %v272_v29, %v268_v28  ;;  %v1738_v38 = vpack.c.bf16 %v274_v32, %v270_v30  ;;  %v314_v28 = vld [vmem:[#allocation5 + $0x730] sm:$0xff]  ;;  %v323_v32 = vld [vmem:[#allocation5 + $0x778] sm:$0xff] }
  0x96   :  { %v1612_v39 = vpack.c.bf16 %v281_v34, %v277_v33  ;;  %v317_v29 = vld [vmem:[#allocation5 + $0x748] sm:$0xff]  ;;  %v82_v17 = vld [vmem:[#allocation2 + $0x10] sm:$0xff] }
  0x97   :  { %1591 = vmatpush1.bf16.msra.mxu0 %v1590_v40  ;;  %v276_v40 = vld [vmem:[#allocation5 + $0x600] sm:$0xff]  ;;  %v321_v30 = vld [vmem:[#allocation5 + $0x768] sm:$0xff] }
  0x98   :  { %1719 = vmatpush1.bf16.msra.mxu1 %v1718_v41  ;;  %1593 = vmatprep.subr.bf16.mxu0 %v1592_v42  ;;  %v280_v41 = vld [vmem:[#allocation5 + $0x620] sm:$0xff]  ;;  %v278_v42 = vld [vmem:[#allocation5 + $0x610] sm:$0xff]  ;;  %v1632_v35 = vpack.c.bf16 %v321_v30, %v317_v29  ;;  %v673_v29 = vld [vmem:[#allocation7 + $0xb8] sm:$0xff] }
  0x99   :  { %1721 = vmatprep.subr.bf16.mxu1 %v1720_v46  ;;  %v289_v46 = vld [vmem:[#allocation5 + $0x668] sm:$0xff]  ;;  %v1614_v49 = vpack.c.bf16 %v280_v41, %v276_v40  ;;  %v1742_v50 = vpack.c.bf16 %v282_v44, %v278_v42  ;;  %v322_v40 = vld [vmem:[#allocation5 + $0x770] sm:$0xff]  ;;  %v331_v44 = vld [vmem:[#allocation5 + $0x7b8] sm:$0xff] }
  0x9a   :  { %v1616_v51 = vpack.c.bf16 %v289_v46, %v285_v45  ;;  %v325_v41 = vld [vmem:[#allocation5 + $0x788] sm:$0xff] }
  0x9b   :  { %1595 = vmatpush1.bf16.msra.mxu0 %v1594_v52  ;;  %v284_v52 = vld [vmem:[#allocation5 + $0x640] sm:$0xff]  ;;  %v329_v42 = vld [vmem:[#allocation5 + $0x7a8] sm:$0xff] }
  0x9c   :  { %1723 = vmatpush1.bf16.msra.mxu1 %v1722_v53  ;;  %1597 = vmatprep.subr.bf16.mxu0 %v1596_v54  ;;  %v288_v53 = vld [vmem:[#allocation5 + $0x660] sm:$0xff]  ;;  %v286_v54 = vld [vmem:[#allocation5 + $0x650] sm:$0xff]  ;;  %v1636_v47 = vpack.c.bf16 %v329_v42, %v325_v41  ;;  %v681_v41 = vld [vmem:[#allocation7 + $0xf8] sm:$0xff] }
  0x9d   :  { %1725 = vmatprep.subr.bf16.mxu1 %v1724_v58  ;;  %v297_v58 = vld [vmem:[#allocation5 + $0x6a8] sm:$0xff]  ;;  %v1618_v61 = vpack.c.bf16 %v288_v53, %v284_v52  ;;  %v1746_v62 = vpack.c.bf16 %v290_v56, %v286_v54  ;;  %v330_v52 = vld [vmem:[#allocation5 + $0x7b0] sm:$0xff]  ;;  %v339_v56 = vld [vmem:[#allocation5 + $0x7f8] sm:$0xff] }
  0x9e   :  { %v1620_v63 = vpack.c.bf16 %v297_v58, %v293_v57  ;;  %v333_v53 = vld [vmem:[#allocation5 + $0x7c8] sm:$0xff] }
  0x9f   :  { %1599 = vmatpush1.bf16.msra.mxu0 %v1598_v0  ;;  %v292_v0 = vld [vmem:[#allocation5 + $0x680] sm:$0xff]  ;;  %v337_v54 = vld [vmem:[#allocation5 + $0x7e8] sm:$0xff] }
  0xa0   :  { %1727 = vmatpush1.bf16.msra.mxu1 %v1726_v1  ;;  %1601 = vmatprep.subr.bf16.mxu0 %v1600_v2  ;;  %v296_v1 = vld [vmem:[#allocation5 + $0x6a0] sm:$0xff]  ;;  %v294_v2 = vld [vmem:[#allocation5 + $0x690] sm:$0xff]  ;;  %v1640_v59 = vpack.c.bf16 %v337_v54, %v333_v53  ;;  %v689_v53 = vld [vmem:[#allocation7 + $0x138] sm:$0xff] }
  0xa1   :  { %1729 = vmatprep.subr.bf16.mxu1 %v1728_v6  ;;  %v305_v6 = vld [vmem:[#allocation5 + $0x6e8] sm:$0xff]  ;;  %v1622_v9 = vpack.c.bf16 %v296_v1, %v292_v0  ;;  %v1750_v10 = vpack.c.bf16 %v298_v4, %v294_v2  ;;  %v338_v0 = vld [vmem:[#allocation5 + $0x7f0] sm:$0xff]  ;;  %v657_v4 = vld [vmem:[#allocation7 + $0x38] sm:$0xff] }
  0xa2   :  { %v1624_v11 = vpack.c.bf16 %v305_v6, %v301_v5  ;;  %v651_v1 = vld [vmem:[#allocation7 + $0x8] sm:$0xff] }
  0xa3   :  { %1603 = vmatpush1.bf16.msra.mxu0 %v1602_v12  ;;  %v300_v12 = vld [vmem:[#allocation5 + $0x6c0] sm:$0xff]  ;;  %v655_v2 = vld [vmem:[#allocation7 + $0x28] sm:$0xff] }
  0xa4   :  { %1731 = vmatpush1.bf16.msra.mxu1 %v1730_v14  ;;  %1605 = vmatprep.subr.bf16.mxu0 %v1604_v15  ;;  %v302_v14 = vld [vmem:[#allocation5 + $0x6d0] sm:$0xff]  ;;  %v1752_v15 = vpack.c.bf16 %v307_v8, %v303_v7  ;;  %v1626_v21 = vpack.c.bf16 %v304_v13, %v300_v12  ;;  %v1772_v7 = vpack.c.bf16 %v655_v2, %v651_v1  ;;  %v650_v8 = vld [vmem:[#allocation7] sm:$0xff]  ;;  %v659_v13 = vld [vmem:[#allocation7 + $0x48] sm:$0xff] }
  0xa5   :  { %1733 = vmatprep.subr.bf16.mxu1 %v1732_v19  ;;  %v311_v19 = vld [vmem:[#allocation5 + $0x718] sm:$0xff]  ;;  %v1754_v22 = vpack.c.bf16 %v306_v16, %v302_v14  ;;  %v656_v12 = vld [vmem:[#allocation7 + $0x30] sm:$0xff]  ;;  %v663_v14 = vld [vmem:[#allocation7 + $0x68] sm:$0xff] }
  0xa6   :  { %v665_v16 = vld [vmem:[#allocation7 + $0x78] sm:$0xff] }
  0xa7   :  { %1607 = vmatpush1.bf16.msra.mxu0 %v1606_v25  ;;  %v312_v25 = vld [vmem:[#allocation5 + $0x720] sm:$0xff]  ;;  %v697_v1 = vld [vmem:[#allocation7 + $0x178] sm:$0xff] }
  0xa8   :  { %1735 = vmatpush1.bf16.msra.mxu1 %v1734_v26  ;;  %1609 = vmatprep.subr.bf16.mxu0 %v1608_v27  ;;  %v310_v26 = vld [vmem:[#allocation5 + $0x710] sm:$0xff]  ;;  %v1756_v27 = vpack.c.bf16 %v315_v20, %v311_v19  ;;  %v1630_v33 = vpack.c.bf16 %v312_v25, %v308_v24  ;;  %v1776_v20 = vpack.c.bf16 %v663_v14, %v659_v13  ;;  %v705_v13 = vld [vmem:[#allocation7 + $0x1b8] sm:$0xff] }
  0xa9   :  { %1737 = vmatprep.subr.bf16.mxu1 %v1736_v31  ;;  %v319_v31 = vld [vmem:[#allocation5 + $0x758] sm:$0xff]  ;;  %v1758_v34 = vpack.c.bf16 %v314_v28, %v310_v26  ;;  %v664_v25 = vld [vmem:[#allocation7 + $0x70] sm:$0xff]  ;;  %v667_v26 = vld [vmem:[#allocation7 + $0x88] sm:$0xff] }
  0xaa   :  { %v669_v28 = vld [vmem:[#allocation7 + $0x98] sm:$0xff] }
  0xab   :  { %1611 = vmatpush1.bf16.msra.mxu0 %v1610_v37  ;;  %v320_v37 = vld [vmem:[#allocation5 + $0x760] sm:$0xff] }
  0xac   :  { %1739 = vmatpush1.bf16.msra.mxu1 %v1738_v38  ;;  %1613 = vmatprep.subr.bf16.mxu0 %v1612_v39  ;;  %v318_v38 = vld [vmem:[#allocation5 + $0x750] sm:$0xff]  ;;  %v1760_v39 = vpack.c.bf16 %v323_v32, %v319_v31  ;;  %v1634_v45 = vpack.c.bf16 %v320_v37, %v316_v36  ;;  %v1908_v36 = vpack.c.bf16 %v673_v29, %v669_v28  ;;  %v706_v29 = vld [vmem:[#allocation7 + $0x1c0] sm:$0xff] }
  0xad   :  { %1741 = vmatprep.subr.bf16.mxu1 %v1740_v43  ;;  %v327_v43 = vld [vmem:[#allocation5 + $0x798] sm:$0xff]  ;;  %v1762_v46 = vpack.c.bf16 %v322_v40, %v318_v38  ;;  %v672_v37 = vld [vmem:[#allocation7 + $0xb0] sm:$0xff]  ;;  %v675_v38 = vld [vmem:[#allocation7 + $0xc8] sm:$0xff] }
  0xae   :  { %v677_v40 = vld [vmem:[#allocation7 + $0xd8] sm:$0xff] }
  0xaf   :  { %1615 = vmatpush1.bf16.msra.mxu0 %v1614_v49  ;;  %v328_v49 = vld [vmem:[#allocation5 + $0x7a0] sm:$0xff] }
  0xb0   :  { %1743 = vmatpush1.bf16.msra.mxu1 %v1742_v50  ;;  %1617 = vmatprep.subr.bf16.mxu0 %v1616_v51  ;;  %v326_v50 = vld [vmem:[#allocation5 + $0x790] sm:$0xff]  ;;  %v1764_v51 = vpack.c.bf16 %v331_v44, %v327_v43  ;;  %v1638_v57 = vpack.c.bf16 %v328_v49, %v324_v48  ;;  %v1912_v48 = vpack.c.bf16 %v681_v41, %v677_v40  ;;  %v714_v41 = vld [vmem:[#allocation7 + $0x200] sm:$0xff] }
  0xb1   :  { %1745 = vmatprep.subr.bf16.mxu1 %v1744_v55  ;;  %v335_v55 = vld [vmem:[#allocation5 + $0x7d8] sm:$0xff]  ;;  %v1766_v58 = vpack.c.bf16 %v330_v52, %v326_v50  ;;  %v680_v49 = vld [vmem:[#allocation7 + $0xf0] sm:$0xff]  ;;  %v683_v50 = vld [vmem:[#allocation7 + $0x108] sm:$0xff] }
  0xb2   :  { %v685_v52 = vld [vmem:[#allocation7 + $0x118] sm:$0xff] }
  0xb3   :  { %1619 = vmatpush1.bf16.msra.mxu0 %v1618_v61  ;;  %v336_v61 = vld [vmem:[#allocation5 + $0x7e0] sm:$0xff] }
  0xb4   :  { %1747 = vmatpush1.bf16.msra.mxu1 %v1746_v62  ;;  %1621 = vmatprep.subr.bf16.mxu0 %v1620_v63  ;;  %v334_v62 = vld [vmem:[#allocation5 + $0x7d0] sm:$0xff]  ;;  %v1768_v63 = vpack.c.bf16 %v339_v56, %v335_v55  ;;  %v1642_v5 = vpack.c.bf16 %v336_v61, %v332_v60  ;;  %v1916_v60 = vpack.c.bf16 %v689_v53, %v685_v52  ;;  %v722_v53 = vld [vmem:[#allocation7 + $0x240] sm:$0xff] }
  0xb5   :  { %1749 = vmatprep.subr.bf16.mxu1 %v1748_v3  ;;  %v653_v3 = vld [vmem:[#allocation7 + $0x18] sm:$0xff]  ;;  %v1770_v6 = vpack.c.bf16 %v338_v0, %v334_v62  ;;  %v688_v61 = vld [vmem:[#allocation7 + $0x130] sm:$0xff]  ;;  %v691_v62 = vld [vmem:[#allocation7 + $0x148] sm:$0xff] }
  0xb6   :  { %v693_v0 = vld [vmem:[#allocation7 + $0x158] sm:$0xff] }
  0xb7   :  { %1623 = vmatpush1.bf16.msra.mxu0 %v1622_v9  ;;  %v654_v9 = vld [vmem:[#allocation7 + $0x20] sm:$0xff] }
  0xb8   :  { %1751 = vmatpush1.bf16.msra.mxu1 %v1750_v10  ;;  %1625 = vmatprep.subr.bf16.mxu0 %v1624_v11  ;;  %v652_v10 = vld [vmem:[#allocation7 + $0x10] sm:$0xff]  ;;  %v1900_v11 = vpack.c.bf16 %v657_v4, %v653_v3  ;;  %v1774_v18 = vpack.c.bf16 %v654_v9, %v650_v8  ;;  %v1920_v8 = vpack.c.bf16 %v697_v1, %v693_v0  ;;  %v730_v1 = vld [vmem:[#allocation7 + $0x280] sm:$0xff] }
  0xb9   :  { %1753 = vmatprep.subr.bf16.mxu1 %v1752_v15  ;;  %v661_v15 = vld [vmem:[#allocation7 + $0x58] sm:$0xff]  ;;  %v1902_v19 = vpack.c.bf16 %v656_v12, %v652_v10  ;;  %v696_v9 = vld [vmem:[#allocation7 + $0x170] sm:$0xff]  ;;  %v699_v10 = vld [vmem:[#allocation7 + $0x188] sm:$0xff] }
  0xba   :  { %v1904_v24 = vpack.c.bf16 %v665_v16, %v661_v15  ;;  %v701_v12 = vld [vmem:[#allocation7 + $0x198] sm:$0xff] }
  0xbb   :  { %1627 = vmatpush1.bf16.msra.mxu0 %v1626_v21  ;;  %v658_v21 = vld [vmem:[#allocation7 + $0x40] sm:$0xff] }
  0xbc   :  { %1755 = vmatpush1.bf16.msra.mxu1 %v1754_v22  ;;  %1629 = vmatprep.subr.bf16.mxu0 %v1628_v23  ;;  %v662_v22 = vld [vmem:[#allocation7 + $0x60] sm:$0xff]  ;;  %v660_v23 = vld [vmem:[#allocation7 + $0x50] sm:$0xff] }
  0xbd   :  { %1757 = vmatprep.subr.bf16.mxu1 %v1756_v27  ;;  %v671_v27 = vld [vmem:[#allocation7 + $0xa8] sm:$0xff]  ;;  %v1778_v30 = vpack.c.bf16 %v662_v22, %v658_v21  ;;  %v1906_v31 = vpack.c.bf16 %v664_v25, %v660_v23  ;;  %v704_v21 = vld [vmem:[#allocation7 + $0x1b0] sm:$0xff]  ;;  %v713_v25 = vld [vmem:[#allocation7 + $0x1f8] sm:$0xff] }
  0xbe   :  { %v1780_v32 = vpack.c.bf16 %v671_v27, %v667_v26  ;;  %v707_v22 = vld [vmem:[#allocation7 + $0x1c8] sm:$0xff] }
  0xbf   :  { %1631 = vmatpush1.bf16.msra.mxu0 %v1630_v33  ;;  %v666_v33 = vld [vmem:[#allocation7 + $0x80] sm:$0xff]  ;;  %v711_v23 = vld [vmem:[#allocation7 + $0x1e8] sm:$0xff] }
  0xc0   :  { %1759 = vmatpush1.bf16.msra.mxu1 %v1758_v34  ;;  %1633 = vmatprep.subr.bf16.mxu0 %v1632_v35  ;;  %v670_v34 = vld [vmem:[#allocation7 + $0xa0] sm:$0xff]  ;;  %v668_v35 = vld [vmem:[#allocation7 + $0x90] sm:$0xff]  ;;  %v1800_v28 = vpack.c.bf16 %v711_v23, %v707_v22 }
  0xc1   :  { %1761 = vmatprep.subr.bf16.mxu1 %v1760_v39  ;;  %v679_v39 = vld [vmem:[#allocation7 + $0xe8] sm:$0xff]  ;;  %v1782_v42 = vpack.c.bf16 %v670_v34, %v666_v33  ;;  %v1910_v43 = vpack.c.bf16 %v672_v37, %v668_v35  ;;  %v712_v33 = vld [vmem:[#allocation7 + $0x1f0] sm:$0xff]  ;;  %v721_v37 = vld [vmem:[#allocation7 + $0x238] sm:$0xff] }
  0xc2   :  { %v1784_v44 = vpack.c.bf16 %v679_v39, %v675_v38  ;;  %v715_v34 = vld [vmem:[#allocation7 + $0x208] sm:$0xff] }
  0xc3   :  { %1635 = vmatpush1.bf16.msra.mxu0 %v1634_v45  ;;  %v674_v45 = vld [vmem:[#allocation7 + $0xc0] sm:$0xff]  ;;  %v719_v35 = vld [vmem:[#allocation7 + $0x228] sm:$0xff] }
  0xc4   :  { %1763 = vmatpush1.bf16.msra.mxu1 %v1762_v46  ;;  %1637 = vmatprep.subr.bf16.mxu0 %v1636_v47  ;;  %v678_v46 = vld [vmem:[#allocation7 + $0xe0] sm:$0xff]  ;;  %v676_v47 = vld [vmem:[#allocation7 + $0xd0] sm:$0xff]  ;;  %v1804_v40 = vpack.c.bf16 %v719_v35, %v715_v34 }
  0xc5   :  { %1765 = vmatprep.subr.bf16.mxu1 %v1764_v51  ;;  %v687_v51 = vld [vmem:[#allocation7 + $0x128] sm:$0xff]  ;;  %v1786_v54 = vpack.c.bf16 %v678_v46, %v674_v45  ;;  %v1914_v55 = vpack.c.bf16 %v680_v49, %v676_v47  ;;  %v720_v45 = vld [vmem:[#allocation7 + $0x230] sm:$0xff]  ;;  %v729_v49 = vld [vmem:[#allocation7 + $0x278] sm:$0xff] }
  0xc6   :  { %v1788_v56 = vpack.c.bf16 %v687_v51, %v683_v50  ;;  %v723_v46 = vld [vmem:[#allocation7 + $0x248] sm:$0xff] }
  0xc7   :  { %1639 = vmatpush1.bf16.msra.mxu0 %v1638_v57  ;;  %v682_v57 = vld [vmem:[#allocation7 + $0x100] sm:$0xff]  ;;  %v727_v47 = vld [vmem:[#allocation7 + $0x268] sm:$0xff] }
  0xc8   :  { %1767 = vmatpush1.bf16.msra.mxu1 %v1766_v58  ;;  %1641 = vmatprep.subr.bf16.mxu0 %v1640_v59  ;;  %v686_v58 = vld [vmem:[#allocation7 + $0x120] sm:$0xff]  ;;  %v684_v59 = vld [vmem:[#allocation7 + $0x110] sm:$0xff]  ;;  %v1808_v52 = vpack.c.bf16 %v727_v47, %v723_v46 }
  0xc9   :  { %1769 = vmatprep.subr.bf16.mxu1 %v1768_v63  ;;  %v695_v63 = vld [vmem:[#allocation7 + $0x168] sm:$0xff]  ;;  %v1790_v2 = vpack.c.bf16 %v686_v58, %v682_v57  ;;  %v1918_v3 = vpack.c.bf16 %v688_v61, %v684_v59  ;;  %v728_v57 = vld [vmem:[#allocation7 + $0x270] sm:$0xff]  ;;  %v737_v61 = vld [vmem:[#allocation7 + $0x2b8] sm:$0xff] }
  0xca   :  { %v1792_v4 = vpack.c.bf16 %v695_v63, %v691_v62  ;;  %v731_v58 = vld [vmem:[#allocation7 + $0x288] sm:$0xff] }
  0xcb   :  { %1643 = vmatpush1.bf16.msra.mxu0 %v1642_v5  ;;  %v690_v5 = vld [vmem:[#allocation7 + $0x140] sm:$0xff]  ;;  %v735_v59 = vld [vmem:[#allocation7 + $0x2a8] sm:$0xff] }
  0xcc   :  { %1771 = vmatpush1.bf16.msra.mxu1 %v1770_v6  ;;  %1773 = vmatprep.subr.bf16.mxu0 %v1772_v7  ;;  %v694_v6 = vld [vmem:[#allocation7 + $0x160] sm:$0xff]  ;;  %v692_v7 = vld [vmem:[#allocation7 + $0x150] sm:$0xff]  ;;  %v1812_v0 = vpack.c.bf16 %v735_v59, %v731_v58  ;;  %v773_v58 = vld [vmem:[#allocation7 + $0x3d8] sm:$0xff] }
  0xcd   :  { %1901 = vmatprep.subr.bf16.mxu1 %v1900_v11  ;;  %v703_v11 = vld [vmem:[#allocation7 + $0x1a8] sm:$0xff]  ;;  %v1794_v14 = vpack.c.bf16 %v694_v6, %v690_v5  ;;  %v1922_v15 = vpack.c.bf16 %v696_v9, %v692_v7  ;;  %v736_v5 = vld [vmem:[#allocation7 + $0x2b0] sm:$0xff]  ;;  %v745_v9 = vld [vmem:[#allocation7 + $0x2f8] sm:$0xff] }
  0xce   :  { %498 = vmatmul.mubr.f32.vlgmr.msra.gmra.mrb[0].mxu0 %v82_v17  ;;  %v1796_v16 = vpack.c.bf16 %v703_v11, %v699_v10  ;;  %v739_v6 = vld [vmem:[#allocation7 + $0x2c8] sm:$0xff] }
  0xcf   :  { %640 = vmatmul.mubr.f32.vlgmr.msra.gmra.mrb[0].mxu1 %v82_v17  ;;  %1775 = vmatpush1.bf16.msra.mxu0 %v1774_v18  ;;  %v698_v17 = vld [vmem:[#allocation7 + $0x180] sm:$0xff]  ;;  %v743_v7 = vld [vmem:[#allocation7 + $0x2e8] sm:$0xff] }
  0xd0   :  { %1903 = vmatpush1.bf16.msra.mxu1 %v1902_v19  ;;  %1777 = vmatprep.subr.bf16.mxu0 %v1776_v20  ;;  %v702_v18 = vld [vmem:[#allocation7 + $0x1a0] sm:$0xff]  ;;  %v700_v19 = vld [vmem:[#allocation7 + $0x190] sm:$0xff]  ;;  %v1924_v20 = vpack.c.bf16 %v705_v13, %v701_v12  ;;  %v1816_v12 = vpack.c.bf16 %v743_v7, %v739_v6  ;;  %v781_v6 = vld [vmem:[#allocation7 + $0x418] sm:$0xff] }
  0xd1   :  { %1905 = vmatprep.subr.bf16.mxu1 %v1904_v24  ;;  %v709_v24 = vld [vmem:[#allocation7 + $0x1d8] sm:$0xff]  ;;  %v1798_v26 = vpack.c.bf16 %v702_v18, %v698_v17  ;;  %v1926_v27 = vpack.c.bf16 %v704_v21, %v700_v19  ;;  %v738_v13 = vld [vmem:[#allocation7 + $0x2c0] sm:$0xff]  ;;  %v744_v17 = vld [vmem:[#allocation7 + $0x2f0] sm:$0xff] }
  0xd2   :  { %v747_v18 = vld [vmem:[#allocation7 + $0x308] sm:$0xff]  ;;  %v753_v21 = vld [vmem:[#allocation7 + $0x338] sm:$0xff] }
  0xd3   :  { %1779 = vmatpush1.bf16.msra.mxu0 %v1778_v30  ;;  %v710_v30 = vld [vmem:[#allocation7 + $0x1e0] sm:$0xff]  ;;  %v751_v19 = vld [vmem:[#allocation7 + $0x328] sm:$0xff] }
  0xd4   :  { %1907 = vmatpush1.bf16.msra.mxu1 %v1906_v31  ;;  %1781 = vmatprep.subr.bf16.mxu0 %v1780_v32  ;;  %v708_v31 = vld [vmem:[#allocation7 + $0x1d0] sm:$0xff]  ;;  %v1928_v32 = vpack.c.bf16 %v713_v25, %v709_v24  ;;  %v1802_v38 = vpack.c.bf16 %v710_v30, %v706_v29  ;;  %v1820_v24 = vpack.c.bf16 %v751_v19, %v747_v18  ;;  %v746_v25 = vld [vmem:[#allocation7 + $0x300] sm:$0xff]  ;;  %v755_v30 = vld [vmem:[#allocation7 + $0x348] sm:$0xff] }
  0xd5   :  { %1909 = vmatprep.subr.bf16.mxu1 %v1908_v36  ;;  %v717_v36 = vld [vmem:[#allocation7 + $0x218] sm:$0xff]  ;;  %v1930_v39 = vpack.c.bf16 %v712_v33, %v708_v31  ;;  %v752_v29 = vld [vmem:[#allocation7 + $0x330] sm:$0xff]  ;;  %v759_v31 = vld [vmem:[#allocation7 + $0x368] sm:$0xff] }
  0xd6   :  { %v761_v33 = vld [vmem:[#allocation7 + $0x378] sm:$0xff] }
  0xd7   :  { %1783 = vmatpush1.bf16.msra.mxu0 %v1782_v42  ;;  %v718_v42 = vld [vmem:[#allocation7 + $0x220] sm:$0xff] }
  0xd8   :  { %1911 = vmatpush1.bf16.msra.mxu1 %v1910_v43  ;;  %1785 = vmatprep.subr.bf16.mxu0 %v1784_v44  ;;  %v716_v43 = vld [vmem:[#allocation7 + $0x210] sm:$0xff]  ;;  %v1932_v44 = vpack.c.bf16 %v721_v37, %v717_v36  ;;  %v1806_v50 = vpack.c.bf16 %v718_v42, %v714_v41  ;;  %v1824_v36 = vpack.c.bf16 %v759_v31, %v755_v30  ;;  %v754_v37 = vld [vmem:[#allocation7 + $0x340] sm:$0xff]  ;;  %v763_v42 = vld [vmem:[#allocation7 + $0x388] sm:$0xff] }
  0xd9   :  { %1913 = vmatprep.subr.bf16.mxu1 %v1912_v48  ;;  %v725_v48 = vld [vmem:[#allocation7 + $0x258] sm:$0xff]  ;;  %v1934_v51 = vpack.c.bf16 %v720_v45, %v716_v43  ;;  %v760_v41 = vld [vmem:[#allocation7 + $0x370] sm:$0xff]  ;;  %v767_v43 = vld [vmem:[#allocation7 + $0x3a8] sm:$0xff] }
  0xda   :  { %v769_v45 = vld [vmem:[#allocation7 + $0x3b8] sm:$0xff]  ;;  %v791_v31 = vld [vmem:[#allocation7 + $0x468] sm:$0xff] }
  0xdb   :  { %1787 = vmatpush1.bf16.msra.mxu0 %v1786_v54  ;;  %v726_v54 = vld [vmem:[#allocation7 + $0x260] sm:$0xff] }
  0xdc   :  { %1915 = vmatpush1.bf16.msra.mxu1 %v1914_v55  ;;  %1789 = vmatprep.subr.bf16.mxu0 %v1788_v56  ;;  %v724_v55 = vld [vmem:[#allocation7 + $0x250] sm:$0xff]  ;;  %v1936_v56 = vpack.c.bf16 %v729_v49, %v725_v48  ;;  %v1810_v62 = vpack.c.bf16 %v726_v54, %v722_v53  ;;  %v1828_v48 = vpack.c.bf16 %v767_v43, %v763_v42  ;;  %v762_v49 = vld [vmem:[#allocation7 + $0x380] sm:$0xff]  ;;  %v795_v42 = vld [vmem:[#allocation7 + $0x488] sm:$0xff] }
  0xdd   :  { %1917 = vmatprep.subr.bf16.mxu1 %v1916_v60  ;;  %v733_v60 = vld [vmem:[#allocation7 + $0x298] sm:$0xff]  ;;  %v1938_v63 = vpack.c.bf16 %v728_v57, %v724_v55  ;;  %v768_v53 = vld [vmem:[#allocation7 + $0x3b0] sm:$0xff]  ;;  %v775_v57 = vld [vmem:[#allocation7 + $0x3e8] sm:$0xff] }
  0xdf   :  { %1791 = vmatpush1.bf16.msra.mxu0 %v1790_v2  ;;  %v734_v2 = vld [vmem:[#allocation7 + $0x2a0] sm:$0xff] }
  0xe0   :  { %1919 = vmatpush1.bf16.msra.mxu1 %v1918_v3  ;;  %1793 = vmatprep.subr.bf16.mxu0 %v1792_v4  ;;  %v732_v3 = vld [vmem:[#allocation7 + $0x290] sm:$0xff]  ;;  %v1940_v4 = vpack.c.bf16 %v737_v61, %v733_v60  ;;  %v1814_v10 = vpack.c.bf16 %v734_v2, %v730_v1  ;;  %v777_v60 = vld [vmem:[#allocation7 + $0x3f8] sm:$0xff]  ;;  %v770_v61 = vld [vmem:[#allocation7 + $0x3c0] sm:$0xff] }
  0xe1   :  { %1921 = vmatprep.subr.bf16.mxu1 %v1920_v8  ;;  %v741_v8 = vld [vmem:[#allocation7 + $0x2d8] sm:$0xff]  ;;  %v1942_v11 = vpack.c.bf16 %v736_v5, %v732_v3  ;;  %v772_v1 = vld [vmem:[#allocation7 + $0x3d0] sm:$0xff]  ;;  %v783_v5 = vld [vmem:[#allocation7 + $0x428] sm:$0xff] }
  0xe2   :  { %v776_v2 = vld [vmem:[#allocation7 + $0x3f0] sm:$0xff] }
  0xe3   :  { %1795 = vmatpush1.bf16.msra.mxu0 %v1794_v14  ;;  %v742_v14 = vld [vmem:[#allocation7 + $0x2e0] sm:$0xff]  ;;  %v1962_v3 = vpack.c.bf16 %v776_v2, %v772_v1 }
  0xe4   :  { %1923 = vmatpush1.bf16.msra.mxu1 %v1922_v15  ;;  %1797 = vmatprep.subr.bf16.mxu0 %v1796_v16  ;;  %v740_v15 = vld [vmem:[#allocation7 + $0x2d0] sm:$0xff]  ;;  %v1944_v16 = vpack.c.bf16 %v745_v9, %v741_v8  ;;  %v1818_v22 = vpack.c.bf16 %v742_v14, %v738_v13  ;;  %v785_v8 = vld [vmem:[#allocation7 + $0x438] sm:$0xff]  ;;  %v2344_v13 = vld [vmem:[%s2392_s2] sm:$0xf] }
  0xe5   :  { %1925 = vmatprep.subr.bf16.mxu1 %v1924_v20  ;;  %v749_v20 = vld [vmem:[#allocation7 + $0x318] sm:$0xff]  ;;  %v1946_v23 = vpack.c.bf16 %v744_v17, %v740_v15  ;;  %v1964_v9 = vpack.c.bf16 %v785_v8, %v781_v6  ;;  %v815_v6 = vld [vmem:[#allocation7 + $0x528] sm:$0xff] }
  0xe6   :  { %v817_v8 = vld [vmem:[#allocation7 + $0x538] sm:$0xff] }
  0xe7   :  { %1799 = vmatpush1.bf16.msra.mxu0 %v1798_v26  ;;  %v750_v26 = vld [vmem:[#allocation7 + $0x320] sm:$0xff] }
  0xe8   :  { %1927 = vmatpush1.bf16.msra.mxu1 %v1926_v27  ;;  %1801 = vmatprep.subr.bf16.mxu0 %v1800_v28  ;;  %v748_v27 = vld [vmem:[#allocation7 + $0x310] sm:$0xff]  ;;  %v1948_v28 = vpack.c.bf16 %v753_v21, %v749_v20  ;;  %v1822_v34 = vpack.c.bf16 %v750_v26, %v746_v25  ;;  %v778_v20 = vld [vmem:[#allocation7 + $0x400] sm:$0xff] }
  0xe9   :  { %1929 = vmatprep.subr.bf16.mxu1 %v1928_v32  ;;  %v757_v32 = vld [vmem:[#allocation7 + $0x358] sm:$0xff]  ;;  %v1950_v35 = vpack.c.bf16 %v752_v29, %v748_v27  ;;  %v780_v25 = vld [vmem:[#allocation7 + $0x410] sm:$0xff]  ;;  %v787_v29 = vld [vmem:[#allocation7 + $0x448] sm:$0xff] }
  0xea   :  { %v784_v26 = vld [vmem:[#allocation7 + $0x430] sm:$0xff]  ;;  %v1840_v43 = vpack.c.bf16 %v791_v31, %v787_v29  ;;  %v818_v29 = vld [vmem:[#allocation7 + $0x540] sm:$0xff] }
  0xeb   :  { %1803 = vmatpush1.bf16.msra.mxu0 %v1802_v38  ;;  %v758_v38 = vld [vmem:[#allocation7 + $0x360] sm:$0xff] }
  0xec   :  { %1931 = vmatpush1.bf16.msra.mxu1 %v1930_v39  ;;  %1805 = vmatprep.subr.bf16.mxu0 %v1804_v40  ;;  %v756_v39 = vld [vmem:[#allocation7 + $0x350] sm:$0xff]  ;;  %v1952_v40 = vpack.c.bf16 %v761_v33, %v757_v32  ;;  %v1826_v46 = vpack.c.bf16 %v758_v38, %v754_v37  ;;  %v789_v32 = vld [vmem:[#allocation7 + $0x458] sm:$0xff]  ;;  %v786_v37 = vld [vmem:[#allocation7 + $0x440] sm:$0xff] }
  0xed   :  { %1933 = vmatprep.subr.bf16.mxu1 %v1932_v44  ;;  %v765_v44 = vld [vmem:[#allocation7 + $0x398] sm:$0xff]  ;;  %v1954_v47 = vpack.c.bf16 %v760_v41, %v756_v39  ;;  %v790_v38 = vld [vmem:[#allocation7 + $0x460] sm:$0xff]  ;;  %v792_v41 = vld [vmem:[#allocation7 + $0x470] sm:$0xff] }
  0xee   :  { %v793_v33 = vld [vmem:[#allocation7 + $0x478] sm:$0xff] }
  0xef   :  { %1807 = vmatpush1.bf16.msra.mxu0 %v1806_v50  ;;  %v766_v50 = vld [vmem:[#allocation7 + $0x3a0] sm:$0xff] }
  0xf0   :  { %1935 = vmatpush1.bf16.msra.mxu1 %v1934_v51  ;;  %1809 = vmatprep.subr.bf16.mxu0 %v1808_v52  ;;  %v1956_v51 = vpack.c.bf16 %v769_v45, %v765_v44  ;;  %v764_v52 = vld [vmem:[#allocation7 + $0x390] sm:$0xff]  ;;  %v1830_v54 = vpack.c.bf16 %v766_v50, %v762_v49  ;;  %v1968_v44 = vpack.c.bf16 %v793_v33, %v789_v32  ;;  %v799_v45 = vld [vmem:[#allocation7 + $0x4a8] sm:$0xff] }
  0xf1   :  { %1937 = vmatprep.subr.bf16.mxu1 %v1936_v56  ;;  %v1958_v55 = vpack.c.bf16 %v768_v53, %v764_v52  ;;  %v771_v56 = vld [vmem:[#allocation7 + $0x3c8] sm:$0xff]  ;;  %v1842_v49 = vpack.c.bf16 %v790_v38, %v786_v37  ;;  %v798_v52 = vld [vmem:[#allocation7 + $0x4a0] sm:$0xff]  ;;  %v1844_v53 = vpack.c.bf16 %v799_v45, %v795_v42  ;;  %v820_v33 = vld [vmem:[#allocation7 + $0x550] sm:$0xff] }
  0xf2   :  { %v1832_v59 = vpack.c.bf16 %v775_v57, %v771_v56  ;;  %v800_v56 = vld [vmem:[#allocation7 + $0x4b0] sm:$0xff]  ;;  %v803_v57 = vld [vmem:[#allocation7 + $0x4c8] sm:$0xff]  ;;  %v829_v37 = vld [vmem:[#allocation7 + $0x598] sm:$0xff] }
  0xf3   :  { %1811 = vmatpush1.bf16.msra.mxu0 %v1810_v62  ;;  %v774_v62 = vld [vmem:[#allocation7 + $0x3e0] sm:$0xff]  ;;  %v833_v38 = vld [vmem:[#allocation7 + $0x5b8] sm:$0xff]  ;;  %v828_v45 = vld [vmem:[#allocation7 + $0x590] sm:$0xff] }
  0xf4   :  { %1939 = vmatpush1.bf16.msra.mxu1 %v1938_v63  ;;  %1813 = vmatprep.subr.bf16.mxu0 %v1812_v0  ;;  %v1960_v63 = vpack.c.bf16 %v777_v60, %v773_v58  ;;  %v1834_v0 = vpack.c.bf16 %v774_v62, %v770_v61  ;;  %v807_v58 = vld [vmem:[#allocation7 + $0x4e8] sm:$0xff]  ;;  %v809_v60 = vld [vmem:[#allocation7 + $0x4f8] sm:$0xff]  ;;  %v830_v42 = vld [vmem:[#allocation7 + $0x5a0] sm:$0xff] }
  0xf5   :  { %1941 = vmatprep.subr.bf16.mxu1 %v1940_v4  ;;  %v779_v4 = vld [vmem:[#allocation7 + $0x408] sm:$0xff]  ;;  %v1848_v1 = vpack.c.bf16 %v807_v58, %v803_v57  ;;  %v836_v57 = vld [vmem:[#allocation7 + $0x5d0] sm:$0xff] }
  0xf6   :  { %v1836_v7 = vpack.c.bf16 %v783_v5, %v779_v4  ;;  %v808_v4 = vld [vmem:[#allocation7 + $0x4f0] sm:$0xff]  ;;  %v811_v5 = vld [vmem:[#allocation7 + $0x508] sm:$0xff] }
  0xf7   :  { %1815 = vmatpush1.bf16.msra.mxu0 %v1814_v10  ;;  %v342_v10 = vlaneseq  ;;  %v840_v58 = vld [vmem:[#allocation7 + $0x5f0] sm:$0xff] }
  0xf8   :  { %1943 = vmatpush1.bf16.msra.mxu1 %v1942_v11  ;;  %1817 = vmatprep.subr.bf16.mxu0 %v1816_v12 }
  0xf9   :  { %1945 = vmatprep.subr.bf16.mxu1 %v1944_v16  ;;  %v2338_v11 = vshrl.u32 %v342_v10, 7 }
  0xfb   :  { %1819 = vmatpush1.bf16.msra.mxu0 %v1818_v22  ;;  %v344_v12 = vsub.s32 0, %v2338_v11  ;;  %v348_v14 = vsub.s32 1, %v2338_v11  ;;  %v356_v15 = vsub.s32 3, %v2338_v11 }
  0xfc   :  { %1947 = vmatpush1.bf16.msra.mxu1 %v1946_v23  ;;  %1821 = vmatprep.subr.bf16.mxu0 %v1820_v24  ;;  %v782_v24 = vld [vmem:[#allocation7 + $0x420] sm:$0xff] }
  0xfd   :  { %1949 = vmatprep.subr.bf16.mxu1 %v1948_v28  ;;  %v345_v16 = vrot.slane %v2344_v13, %v344_v12  ;;  %v349_v17 = vrot.slane %v2344_v13, %v348_v14  ;;  %v357_v18 = vrot.slane %v2344_v13, %v356_v15 }
  0xff   :  { %1823 = vmatpush1.bf16.msra.mxu0 %v1822_v34 }
 0x100   :  { %1951 = vmatpush1.bf16.msra.mxu1 %v1950_v35  ;;  %1825 = vmatprep.subr.bf16.mxu0 %v1824_v36  ;;  %v1838_v35 = vpack.c.bf16 %v782_v24, %v778_v20  ;;  %v1966_v36 = vpack.c.bf16 %v784_v26, %v780_v25  ;;  %v812_v20 = vld [vmem:[#allocation7 + $0x510] sm:$0xff]  ;;  %v823_v24 = vld [vmem:[#allocation7 + $0x568] sm:$0xff]  ;;  %v821_v25 = vld [vmem:[#allocation7 + $0x558] sm:$0xff] }
 0x101   :  { %1953 = vmatprep.subr.bf16.mxu1 %v1952_v40  ;;  %v788_v40 = vld [vmem:[#allocation7 + $0x450] sm:$0xff]  ;;  %v825_v26 = vld [vmem:[#allocation7 + $0x578] sm:$0xff] }
 0x102   :  { %v1970_v50 = vpack.c.bf16 %v792_v41, %v788_v40  ;;  %v1984_v32 = vpack.c.bf16 %v825_v26, %v821_v25  ;;  %v826_v41 = vld [vmem:[#allocation7 + $0x580] sm:$0xff]  ;;  %v859_v25 = vld [vmem:[#allocation7 + $0x688] sm:$0xff] }
 0x103   :  { %1827 = vmatpush1.bf16.msra.mxu0 %v1826_v46  ;;  %v797_v46 = vld [vmem:[#allocation7 + $0x498] sm:$0xff]  ;;  %v863_v26 = vld [vmem:[#allocation7 + $0x6a8] sm:$0xff] }
 0x104   :  { %1955 = vmatpush1.bf16.msra.mxu1 %v1954_v47  ;;  %1829 = vmatprep.subr.bf16.mxu0 %v1828_v48  ;;  %v801_v47 = vld [vmem:[#allocation7 + $0x4b8] sm:$0xff] }
 0x105   :  { %1957 = vmatprep.subr.bf16.mxu1 %v1956_v51  ;;  %v794_v51 = vld [vmem:[#allocation7 + $0x480] sm:$0xff] }
 0x106   :  { %v1846_v61 = vpack.c.bf16 %v798_v52, %v794_v51  ;;  %v1862_v51 = vpack.c.bf16 %v830_v42, %v826_v41 }
 0x107   :  { %1831 = vmatpush1.bf16.msra.mxu0 %v1830_v54  ;;  %v1972_v54 = vpack.c.bf16 %v801_v47, %v797_v46  ;;  %v832_v46 = vld [vmem:[#allocation7 + $0x5b0] sm:$0xff]  ;;  %v835_v47 = vld [vmem:[#allocation7 + $0x5c8] sm:$0xff] }
 0x108   :  { %1959 = vmatpush1.bf16.msra.mxu1 %v1958_v55  ;;  %1833 = vmatprep.subr.bf16.mxu0 %v1832_v59  ;;  %v796_v55 = vld [vmem:[#allocation7 + $0x490] sm:$0xff]  ;;  %v805_v59 = vld [vmem:[#allocation7 + $0x4d8] sm:$0xff]  ;;  %v1990_v52 = vpack.c.bf16 %v832_v46, %v828_v45 }
 0x109   :  { %1961 = vmatprep.subr.bf16.mxu1 %v1960_v63  ;;  %v1974_v62 = vpack.c.bf16 %v800_v56, %v796_v55  ;;  %v802_v63 = vld [vmem:[#allocation7 + $0x4c0] sm:$0xff]  ;;  %v1976_v2 = vpack.c.bf16 %v809_v60, %v805_v59  ;;  %v843_v59 = vld [vmem:[#allocation7 + $0x608] sm:$0xff] }
 0x10a   :  { %v847_v60 = vld [vmem:[#allocation7 + $0x628] sm:$0xff] }
 0x10b   :  { %1835 = vmatpush1.bf16.msra.mxu0 %v1834_v0  ;;  %v806_v0 = vld [vmem:[#allocation7 + $0x4e0] sm:$0xff] }
 0x10c   :  { %1963 = vmatpush1.bf16.msra.mxu1 %v1962_v3  ;;  %1837 = vmatprep.subr.bf16.mxu0 %v1836_v7  ;;  %v804_v3 = vld [vmem:[#allocation7 + $0x4d0] sm:$0xff]  ;;  %v813_v7 = vld [vmem:[#allocation7 + $0x518] sm:$0xff] }
 0x10d   :  { %1965 = vmatprep.subr.bf16.mxu1 %v1964_v9  ;;  %v1850_v9 = vpack.c.bf16 %v806_v0, %v802_v63  ;;  %v1978_v10 = vpack.c.bf16 %v808_v4, %v804_v3  ;;  %v1994_v0 = vpack.c.bf16 %v840_v58, %v836_v57  ;;  %v1868_v3 = vpack.c.bf16 %v847_v60, %v843_v59  ;;  %v876_v59 = vld [vmem:[#allocation7 + $0x710] sm:$0xff] }
 0x10e   :  { %v880_v60 = vld [vmem:[#allocation7 + $0x730] sm:$0xff] }
 0x1a1   :  { %v499_v19 = vpop.f32.mrb[0].mxu0 }
 0x1a2   :  { %v2092_v21 = vadd.f32 %v499_v19, %v345_v16  ;;  %v2357_v22 = vpop.f32.mrb[0].mxu1  ;;  %v501_v23 = vpop.f32.mrb[1].mxu0  ;;  %v810_v16 = vld [vmem:[#allocation7 + $0x500] sm:$0xff]  ;;  %v1980_v19 = vpack.c.bf16 %v817_v8, %v813_v7  ;;  %v851_v7 = vld [vmem:[#allocation7 + $0x648] sm:$0xff] }
 0x1a3   :  { %v2093_v27 = vadd.f32 %v501_v23, %v349_v17  ;;  %v643_v28 = vpop.f32.mrb[1].mxu1  ;;  %v814_v17 = vld [vmem:[#allocation7 + $0x520] sm:$0xff]  ;;  %v819_v23 = vld [vmem:[#allocation7 + $0x548] sm:$0xff] }
 0x1a4   :  { %v2095_v30 = vadd.f32 %v643_v28, %v357_v18  ;;  %v646_v39 = vmax.f32 %v2092_v21, 0.0  ;;  %v1852_v18 = vpack.c.bf16 %v815_v6, %v811_v5  ;;  %v816_v21 = vld [vmem:[#allocation7 + $0x530] sm:$0xff]  ;;  %v1856_v31 = vpack.c.bf16 %v823_v24, %v819_v23  ;;  %v855_v8 = vld [vmem:[#allocation7 + $0x668] sm:$0xff] }
 0x1a5   :  { %v647_v34 = vmax.f32 %v2093_v27, 0.0  ;;  %v1854_v27 = vpack.c.bf16 %v814_v17, %v810_v16  ;;  %v1982_v28 = vpack.c.bf16 %v816_v21, %v812_v20  ;;  %v844_v5 = vld [vmem:[#allocation7 + $0x610] sm:$0xff]  ;;  %v1872_v20 = vpack.c.bf16 %v855_v8, %v851_v7 }
 0x1a6   :  { %v649_v48 = vmax.f32 %v2095_v30, 0.0  ;;  %v822_v30 = vld [vmem:[#allocation7 + $0x560] sm:$0xff]  ;;  %v848_v6 = vld [vmem:[#allocation7 + $0x630] sm:$0xff] }
 0x1a7   :  { %992 = vmatprep.mubr.f32.mxu0 %v647_v34  ;;  %1134 = vmatprep.mubr.f32.mxu1 %v647_v34  ;;  %v824_v34 = vld [vmem:[#allocation7 + $0x570] sm:$0xff]  ;;  %v1998_v17 = vpack.c.bf16 %v848_v6, %v844_v5 }
 0x1a8   :  { %993 = vmatmul.mubr.f32.vlgmr.msra.gmra.mrb[2].mxu0 %v646_v39  ;;  %1135 = vmatmul.mubr.f32.vlgmr.msra.gmra.mrb[2].mxu1 %v646_v39  ;;  %v1858_v39 = vpack.c.bf16 %v822_v30, %v818_v29  ;;  %v1986_v40 = vpack.c.bf16 %v824_v34, %v820_v33  ;;  %v852_v23 = vld [vmem:[#allocation7 + $0x650] sm:$0xff]  ;;  %v1876_v33 = vpack.c.bf16 %v863_v26, %v859_v25 }
 0x1a9   :  { %1839 = vmatpush1.bf16.msra.mxu0 %v1838_v35  ;;  %1967 = vmatpush1.bf16.msra.mxu1 %v1966_v36  ;;  %v827_v35 = vld [vmem:[#allocation7 + $0x588] sm:$0xff]  ;;  %v856_v24 = vld [vmem:[#allocation7 + $0x670] sm:$0xff] }
 0x1aa   :  { %1063 = vmatprep.mubr.f32.mxu0 %v649_v48  ;;  %1205 = vmatprep.mubr.f32.mxu1 %v649_v48  ;;  %v831_v36 = vld [vmem:[#allocation7 + $0x5a8] sm:$0xff]  ;;  %v2002_v30 = vpack.c.bf16 %v856_v24, %v852_v23  ;;  %v884_v7 = vld [vmem:[#allocation7 + $0x750] sm:$0xff]  ;;  %v352_v23 = vsub.s32 2, %v2338_v11  ;;  %v1445_v11 = vld [vmem:[%s2396_s6] ss:$0 sm:$0xff] }
 0x1ab   :  { %1841 = vmatprep.subr.bf16.mxu0 %v1840_v43  ;;  %1969 = vmatprep.subr.bf16.mxu1 %v1968_v44  ;;  %v1860_v43 = vpack.c.bf16 %v831_v36, %v827_v35  ;;  %v1988_v44 = vpack.c.bf16 %v833_v38, %v829_v37  ;;  %v839_v48 = vld [vmem:[#allocation7 + $0x5e8] sm:$0xff]  ;;  %v860_v35 = vld [vmem:[#allocation7 + $0x690] sm:$0xff] }
 0x1ac   :  { %v1864_v55 = vpack.c.bf16 %v839_v48, %v835_v47  ;;  %v864_v36 = vld [vmem:[#allocation7 + $0x6b0] sm:$0xff]  ;;  %v867_v37 = vld [vmem:[#allocation7 + $0x6c8] sm:$0xff] }
 0x1ad   :  { %1843 = vmatpush1.bf16.msra.mxu0 %v1842_v49  ;;  %1971 = vmatpush1.bf16.msra.mxu1 %v1970_v50  ;;  %v837_v49 = vld [vmem:[#allocation7 + $0x5d8] sm:$0xff]  ;;  %v871_v38 = vld [vmem:[#allocation7 + $0x6e8] sm:$0xff]  ;;  %v2006_v42 = vpack.c.bf16 %v864_v36, %v860_v35  ;;  %v868_v47 = vld [vmem:[#allocation7 + $0x6d0] sm:$0xff]  ;;  %v353_v36 = vrot.slane %v2344_v13, %v352_v23 }
 0x1ae   :  { %1845 = vmatprep.subr.bf16.mxu0 %v1844_v53  ;;  %1973 = vmatprep.subr.bf16.mxu1 %v1972_v54  ;;  %v841_v50 = vld [vmem:[#allocation7 + $0x5f8] sm:$0xff]  ;;  %v834_v53 = vld [vmem:[#allocation7 + $0x5c0] sm:$0xff]  ;;  %v1880_v45 = vpack.c.bf16 %v871_v38, %v867_v37  ;;  %v872_v48 = vld [vmem:[#allocation7 + $0x6f0] sm:$0xff] }
 0x1af   :  { %v838_v54 = vld [vmem:[#allocation7 + $0x5e0] sm:$0xff]  ;;  %v1992_v56 = vpack.c.bf16 %v841_v50, %v837_v49  ;;  %v875_v49 = vld [vmem:[#allocation7 + $0x708] sm:$0xff]  ;;  %v888_v8 = vld [vmem:[#allocation7 + $0x770] sm:$0xff] }
 0x1b0   :  { %v1866_v63 = vpack.c.bf16 %v838_v54, %v834_v53  ;;  %v879_v50 = vld [vmem:[#allocation7 + $0x728] sm:$0xff]  ;;  %v2010_v54 = vpack.c.bf16 %v872_v48, %v868_v47  ;;  %v892_v26 = vld [vmem:[#allocation7 + $0x790] sm:$0xff]  ;;  %v902_v35 = vld [vmem:[#allocation7 + $0x7e0] sm:$0xff] }
 0x1b1   :  { %1847 = vmatpush1.bf16.msra.mxu0 %v1846_v61  ;;  %1975 = vmatpush1.bf16.msra.mxu1 %v1974_v62  ;;  %v845_v61 = vld [vmem:[#allocation7 + $0x618] sm:$0xff]  ;;  %v1884_v57 = vpack.c.bf16 %v879_v50, %v875_v49  ;;  %v1216_v47 = vld [vmem:[#allocation8] sm:$0xff]  ;;  %v1217_v48 = vld [vmem:[#allocation8 + $0x8] sm:$0xff]  ;;  %v2094_v49 = vadd.f32 %v2357_v22, %v353_v36 }
 0x1b2   :  { %1849 = vmatprep.subr.bf16.mxu0 %v1848_v1  ;;  %1977 = vmatprep.subr.bf16.mxu1 %v1976_v2  ;;  %v849_v62 = vld [vmem:[#allocation7 + $0x638] sm:$0xff]  ;;  %v842_v1 = vld [vmem:[#allocation7 + $0x600] sm:$0xff] }
 0x1b3   :  { %v846_v2 = vld [vmem:[#allocation7 + $0x620] sm:$0xff]  ;;  %v1996_v4 = vpack.c.bf16 %v849_v62, %v845_v61  ;;  %v883_v61 = vld [vmem:[#allocation7 + $0x748] sm:$0xff] }
 0x1b4   :  { %v1870_v16 = vpack.c.bf16 %v846_v2, %v842_v1  ;;  %v887_v62 = vld [vmem:[#allocation7 + $0x768] sm:$0xff]  ;;  %v2014_v2 = vpack.c.bf16 %v880_v60, %v876_v59  ;;  %v1218_v59 = vld [vmem:[#allocation8 + $0x10] sm:$0xff]  ;;  %v1219_v60 = vld [vmem:[#allocation8 + $0x18] sm:$0xff] }
 0x1b5   :  { %1851 = vmatpush1.bf16.msra.mxu0 %v1850_v9  ;;  %1979 = vmatpush1.bf16.msra.mxu1 %v1978_v10  ;;  %v853_v9 = vld [vmem:[#allocation7 + $0x658] sm:$0xff]  ;;  %v1888_v5 = vpack.c.bf16 %v887_v62, %v883_v61  ;;  %v648_v61 = vmax.f32 %v2094_v49, 0.0 }
 0x1b6   :  { %1853 = vmatprep.subr.bf16.mxu0 %v1852_v18  ;;  %1981 = vmatprep.subr.bf16.mxu1 %v1980_v19  ;;  %v857_v10 = vld [vmem:[#allocation7 + $0x678] sm:$0xff]  ;;  %v850_v18 = vld [vmem:[#allocation7 + $0x640] sm:$0xff] }
 0x1b7   :  { %v854_v19 = vld [vmem:[#allocation7 + $0x660] sm:$0xff]  ;;  %v2000_v21 = vpack.c.bf16 %v857_v10, %v853_v9  ;;  %v891_v9 = vld [vmem:[#allocation7 + $0x788] sm:$0xff] }
 0x1b8   :  { %v1874_v29 = vpack.c.bf16 %v854_v19, %v850_v18  ;;  %v895_v10 = vld [vmem:[#allocation7 + $0x7a8] sm:$0xff]  ;;  %v2018_v19 = vpack.c.bf16 %v888_v8, %v884_v7  ;;  %v1220_v7 = vld [vmem:[#allocation8 + $0x20] sm:$0xff] }
 0x1b9   :  { %1855 = vmatpush1.bf16.msra.mxu0 %v1854_v27  ;;  %1983 = vmatpush1.bf16.msra.mxu1 %v1982_v28  ;;  %v861_v27 = vld [vmem:[#allocation7 + $0x698] sm:$0xff]  ;;  %v1892_v24 = vpack.c.bf16 %v895_v10, %v891_v9  ;;  %v1221_v8 = vld [vmem:[#allocation8 + $0x28] sm:$0xff] }
 0x1ba   :  { %1857 = vmatprep.subr.bf16.mxu0 %v1856_v31  ;;  %1985 = vmatprep.subr.bf16.mxu1 %v1984_v32  ;;  %v865_v28 = vld [vmem:[#allocation7 + $0x6b8] sm:$0xff]  ;;  %v858_v31 = vld [vmem:[#allocation7 + $0x680] sm:$0xff] }
 0x1bb   :  { %v862_v32 = vld [vmem:[#allocation7 + $0x6a0] sm:$0xff]  ;;  %v2004_v34 = vpack.c.bf16 %v865_v28, %v861_v27  ;;  %v896_v27 = vld [vmem:[#allocation7 + $0x7b0] sm:$0xff]  ;;  %v899_v28 = vld [vmem:[#allocation7 + $0x7c8] sm:$0xff] }
 0x1bc   :  { %v1878_v41 = vpack.c.bf16 %v862_v32, %v858_v31  ;;  %v905_v31 = vld [vmem:[#allocation7 + $0x7f8] sm:$0xff] }
 0x1bd   :  { %1859 = vmatpush1.bf16.msra.mxu0 %v1858_v39  ;;  %1987 = vmatpush1.bf16.msra.mxu1 %v1986_v40  ;;  %v869_v39 = vld [vmem:[#allocation7 + $0x6d8] sm:$0xff] }
 0x1be   :  { %1861 = vmatprep.subr.bf16.mxu0 %v1860_v43  ;;  %1989 = vmatprep.subr.bf16.mxu1 %v1988_v44  ;;  %v873_v40 = vld [vmem:[#allocation7 + $0x6f8] sm:$0xff]  ;;  %v866_v43 = vld [vmem:[#allocation7 + $0x6c0] sm:$0xff] }
 0x1bf   :  { %v870_v44 = vld [vmem:[#allocation7 + $0x6e0] sm:$0xff]  ;;  %v2008_v46 = vpack.c.bf16 %v873_v40, %v869_v39  ;;  %v900_v39 = vld [vmem:[#allocation7 + $0x7d0] sm:$0xff] }
 0x1c0   :  { %v1882_v53 = vpack.c.bf16 %v870_v44, %v866_v43  ;;  %v904_v40 = vld [vmem:[#allocation7 + $0x7f0] sm:$0xff]  ;;  %v1264_v43 = vld [vmem:[#allocation8 + $0x180] sm:$0xff]  ;;  %v1265_v44 = vld [vmem:[#allocation8 + $0x188] sm:$0xff] }
 0x1c1   :  { %1863 = vmatpush1.bf16.msra.mxu0 %v1862_v51  ;;  %1991 = vmatpush1.bf16.msra.mxu1 %v1990_v52  ;;  %v877_v51 = vld [vmem:[#allocation7 + $0x718] sm:$0xff]  ;;  %v2060_v50 = vpack.c.bf16 %v1265_v44, %v1264_v43  ;;  %v1257_v43 = vld [vmem:[#allocation8 + $0x148] sm:$0xff]  ;;  %v1242_v44 = vld [vmem:[#allocation8 + $0xd0] sm:$0xff] }
 0x1c2   :  { %1865 = vmatprep.subr.bf16.mxu0 %v1864_v55  ;;  %1993 = vmatprep.subr.bf16.mxu1 %v1992_v56  ;;  %v881_v52 = vld [vmem:[#allocation7 + $0x738] sm:$0xff]  ;;  %v874_v55 = vld [vmem:[#allocation7 + $0x700] sm:$0xff] }
 0x1c3   :  { %v878_v56 = vld [vmem:[#allocation7 + $0x720] sm:$0xff]  ;;  %v2012_v58 = vpack.c.bf16 %v881_v52, %v877_v51  ;;  %v1249_v52 = vld [vmem:[#allocation8 + $0x108] sm:$0xff] }
 0x1c4   :  { %v1886_v1 = vpack.c.bf16 %v878_v56, %v874_v55  ;;  %v1248_v51 = vld [vmem:[#allocation8 + $0x100] sm:$0xff]  ;;  %v1266_v55 = vld [vmem:[#allocation8 + $0x190] sm:$0xff]  ;;  %v1267_v56 = vld [vmem:[#allocation8 + $0x198] sm:$0xff] }
 0x1c5   :  { %1867 = vmatpush1.bf16.msra.mxu0 %v1866_v63  ;;  %1995 = vmatpush1.bf16.msra.mxu1 %v1994_v0  ;;  %v885_v63 = vld [vmem:[#allocation7 + $0x758] sm:$0xff]  ;;  %v2064_v62 = vpack.c.bf16 %v1267_v56, %v1266_v55  ;;  %v1244_v55 = vld [vmem:[#allocation8 + $0xe0] sm:$0xff]  ;;  %v1245_v56 = vld [vmem:[#allocation8 + $0xe8] sm:$0xff] }
 0x1c6   :  { %1869 = vmatprep.subr.bf16.mxu0 %v1868_v3  ;;  %1997 = vmatprep.subr.bf16.mxu1 %v1996_v4  ;;  %v889_v0 = vld [vmem:[#allocation7 + $0x778] sm:$0xff]  ;;  %v882_v3 = vld [vmem:[#allocation7 + $0x740] sm:$0xff] }
 0x1c7   :  { %v886_v4 = vld [vmem:[#allocation7 + $0x760] sm:$0xff]  ;;  %v2016_v6 = vpack.c.bf16 %v889_v0, %v885_v63  ;;  %v1250_v63 = vld [vmem:[#allocation8 + $0x110] sm:$0xff]  ;;  %v1251_v0 = vld [vmem:[#allocation8 + $0x118] sm:$0xff] }
 0x1c8   :  { %v1890_v18 = vpack.c.bf16 %v886_v4, %v882_v3  ;;  %v1268_v3 = vld [vmem:[#allocation8 + $0x1a0] sm:$0xff]  ;;  %v1269_v4 = vld [vmem:[#allocation8 + $0x1a8] sm:$0xff] }
 0x1c9   :  { %1871 = vmatpush1.bf16.msra.mxu0 %v1870_v16  ;;  %1999 = vmatpush1.bf16.msra.mxu1 %v1998_v17  ;;  %v893_v16 = vld [vmem:[#allocation7 + $0x798] sm:$0xff]  ;;  %v2068_v10 = vpack.c.bf16 %v1269_v4, %v1268_v3  ;;  %v1246_v4 = vld [vmem:[#allocation8 + $0xf0] sm:$0xff] }
 0x1ca   :  { %1873 = vmatprep.subr.bf16.mxu0 %v1872_v20  ;;  %2001 = vmatprep.subr.bf16.mxu1 %v2000_v21  ;;  %v897_v17 = vld [vmem:[#allocation7 + $0x7b8] sm:$0xff]  ;;  %v890_v20 = vld [vmem:[#allocation7 + $0x780] sm:$0xff] }
 0x1cb   :  { %v894_v21 = vld [vmem:[#allocation7 + $0x7a0] sm:$0xff]  ;;  %v2020_v25 = vpack.c.bf16 %v897_v17, %v893_v16  ;;  %v1253_v17 = vld [vmem:[#allocation8 + $0x128] sm:$0xff] }
 0x1cc   :  { %v1894_v32 = vpack.c.bf16 %v894_v21, %v890_v20  ;;  %v1252_v16 = vld [vmem:[#allocation8 + $0x120] sm:$0xff]  ;;  %v1270_v20 = vld [vmem:[#allocation8 + $0x1b0] sm:$0xff]  ;;  %v1271_v21 = vld [vmem:[#allocation8 + $0x1b8] sm:$0xff] }
 0x1cd   :  { %1875 = vmatpush1.bf16.msra.mxu0 %v1874_v29  ;;  %2003 = vmatpush1.bf16.msra.mxu1 %v2002_v30  ;;  %v903_v29 = vld [vmem:[#allocation7 + $0x7e8] sm:$0xff]  ;;  %v901_v30 = vld [vmem:[#allocation7 + $0x7d8] sm:$0xff] }
 0x1ce   :  { %1877 = vmatprep.subr.bf16.mxu0 %v1876_v33  ;;  %2005 = vmatprep.subr.bf16.mxu1 %v2004_v34  ;;  %v2022_v33 = vpack.c.bf16 %v896_v27, %v892_v26  ;;  %v898_v34 = vld [vmem:[#allocation7 + $0x7c0] sm:$0xff]  ;;  %v1896_v37 = vpack.c.bf16 %v903_v29, %v899_v28  ;;  %v2024_v38 = vpack.c.bf16 %v905_v31, %v901_v30  ;;  %v1222_v26 = vld [vmem:[#allocation8 + $0x30] sm:$0xff]  ;;  %v1223_v27 = vld [vmem:[#allocation8 + $0x38] sm:$0xff] }
 0x1cf   :  { %v2072_v29 = vpack.c.bf16 %v1271_v21, %v1270_v20  ;;  %v1254_v30 = vld [vmem:[#allocation8 + $0x130] sm:$0xff]  ;;  %v1255_v31 = vld [vmem:[#allocation8 + $0x138] sm:$0xff]  ;;  %v2042_v36 = vpack.c.bf16 %v1223_v27, %v1222_v26  ;;  %v906_v21 = vld [vmem:[%s2394_s4] sm:$0xf] }
 0x1d0   :  { %v915_v26 = vrot.slane %v906_v21, %v348_v14  ;;  %v923_v27 = vrot.slane %v906_v21, %v356_v15 }
 0x1d1   :  { %1879 = vmatpush1.bf16.msra.mxu0 %v1878_v41  ;;  %2007 = vmatpush1.bf16.msra.mxu1 %v2006_v42  ;;  %v1232_v41 = vld [vmem:[#allocation8 + $0x80] sm:$0xff]  ;;  %v1233_v42 = vld [vmem:[#allocation8 + $0x88] sm:$0xff] }
 0x1d2   :  { %1881 = vmatprep.subr.bf16.mxu0 %v1880_v45  ;;  %2009 = vmatprep.subr.bf16.mxu1 %v2008_v46  ;;  %v1898_v45 = vpack.c.bf16 %v902_v35, %v898_v34  ;;  %v2026_v46 = vpack.c.bf16 %v904_v40, %v900_v39  ;;  %v2028_v13 = vpack.c.bf16 %v1233_v42, %v1232_v41  ;;  %v1272_v34 = vld [vmem:[#allocation8 + $0x1c0] sm:$0xff]  ;;  %v1273_v35 = vld [vmem:[#allocation8 + $0x1c8] sm:$0xff] }
 0x1d3   :  { %v1225_v39 = vld [vmem:[#allocation8 + $0x48] sm:$0xff]  ;;  %v2076_v41 = vpack.c.bf16 %v1273_v35, %v1272_v34  ;;  %v1256_v42 = vld [vmem:[#allocation8 + $0x140] sm:$0xff] }
 0x1d4   :  { %v2078_v49 = vpack.c.bf16 %v1257_v43, %v1256_v42 }
 0x1d5   :  { %1883 = vmatpush1.bf16.msra.mxu0 %v1882_v53  ;;  %2011 = vmatpush1.bf16.msra.mxu1 %v2010_v54  ;;  %v1234_v53 = vld [vmem:[#allocation8 + $0x90] sm:$0xff]  ;;  %v1235_v54 = vld [vmem:[#allocation8 + $0x98] sm:$0xff] }
 0x1d6   :  { %1885 = vmatprep.subr.bf16.mxu0 %v1884_v57  ;;  %2013 = vmatprep.subr.bf16.mxu1 %v2012_v58  ;;  %v2030_v57 = vpack.c.bf16 %v1217_v48, %v1216_v47  ;;  %v2062_v58 = vpack.c.bf16 %v1249_v52, %v1248_v51  ;;  %v2032_v22 = vpack.c.bf16 %v1235_v54, %v1234_v53  ;;  %v1275_v47 = vld [vmem:[#allocation8 + $0x1d8] sm:$0xff]  ;;  %v1258_v53 = vld [vmem:[#allocation8 + $0x150] sm:$0xff] }
 0x1d7   :  { %v1259_v54 = vld [vmem:[#allocation8 + $0x158] sm:$0xff] }
 0x1d9   :  { %1887 = vmatpush1.bf16.msra.mxu0 %v1886_v1  ;;  %2015 = vmatpush1.bf16.msra.mxu1 %v2014_v2  ;;  %v1236_v1 = vld [vmem:[#allocation8 + $0xa0] sm:$0xff]  ;;  %v1237_v2 = vld [vmem:[#allocation8 + $0xa8] sm:$0xff] }
 0x1da   :  { %1889 = vmatprep.subr.bf16.mxu0 %v1888_v5  ;;  %2017 = vmatprep.subr.bf16.mxu1 %v2016_v6  ;;  %v2034_v5 = vpack.c.bf16 %v1219_v60, %v1218_v59  ;;  %v2066_v6 = vpack.c.bf16 %v1251_v0, %v1250_v63  ;;  %v2036_v9 = vpack.c.bf16 %v1237_v2, %v1236_v1  ;;  %v1229_v63 = vld [vmem:[#allocation8 + $0x68] sm:$0xff]  ;;  %v1260_v0 = vld [vmem:[#allocation8 + $0x160] sm:$0xff] }
 0x1db   :  { %v2082_v60 = vpack.c.bf16 %v1259_v54, %v1258_v53  ;;  %v1261_v2 = vld [vmem:[#allocation8 + $0x168] sm:$0xff] }
 0x1dc   :  { %v2086_v3 = vpack.c.bf16 %v1261_v2, %v1260_v0 }
 0x1dd   :  { %1891 = vmatpush1.bf16.msra.mxu0 %v1890_v18  ;;  %2019 = vmatpush1.bf16.msra.mxu1 %v2018_v19  ;;  %v1238_v18 = vld [vmem:[#allocation8 + $0xb0] sm:$0xff]  ;;  %v1239_v19 = vld [vmem:[#allocation8 + $0xb8] sm:$0xff] }
 0x1de   :  { %1893 = vmatprep.subr.bf16.mxu0 %v1892_v24  ;;  %2021 = vmatprep.subr.bf16.mxu1 %v2020_v25  ;;  %v2038_v24 = vpack.c.bf16 %v1221_v8, %v1220_v7  ;;  %v2070_v25 = vpack.c.bf16 %v1253_v17, %v1252_v16  ;;  %v2040_v28 = vpack.c.bf16 %v1239_v19, %v1238_v18  ;;  %v1279_v8 = vld [vmem:[#allocation8 + $0x1f8] sm:$0xff]  ;;  %v1262_v18 = vld [vmem:[#allocation8 + $0x170] sm:$0xff] }
 0x1df   :  { %v1263_v19 = vld [vmem:[#allocation8 + $0x178] sm:$0xff] }
 0x1e0   :  { %v2090_v20 = vpack.c.bf16 %v1263_v19, %v1262_v18 }
 0x1e1   :  { %1895 = vmatpush1.bf16.msra.mxu0 %v1894_v32  ;;  %2023 = vmatpush1.bf16.msra.mxu1 %v2022_v33  ;;  %v1240_v32 = vld [vmem:[#allocation8 + $0xc0] sm:$0xff]  ;;  %v1241_v33 = vld [vmem:[#allocation8 + $0xc8] sm:$0xff] }
 0x1e2   :  { %1897 = vmatprep.subr.bf16.mxu0 %v1896_v37  ;;  %2025 = vmatprep.subr.bf16.mxu1 %v2024_v38  ;;  %v2074_v37 = vpack.c.bf16 %v1255_v31, %v1254_v30  ;;  %v1224_v38 = vld [vmem:[#allocation8 + $0x40] sm:$0xff]  ;;  %v2044_v40 = vpack.c.bf16 %v1241_v33, %v1240_v32 }
 0x1e3   :  { %v2046_v48 = vpack.c.bf16 %v1225_v39, %v1224_v38 }
 0x1e5   :  { %1899 = vmatpush1.bf16.msra.mxu0 %v1898_v45  ;;  %2027 = vmatpush1.bf16.msra.mxu1 %v2026_v46  ;;  %v1243_v45 = vld [vmem:[#allocation8 + $0xd8] sm:$0xff]  ;;  %v1274_v46 = vld [vmem:[#allocation8 + $0x1d0] sm:$0xff] }
 0x1e6   :  { %2029 = vmatprep.subr.bf16.mxu0 %v2028_v13  ;;  %2061 = vmatprep.subr.bf16.mxu1 %v2060_v50  ;;  %v1226_v13 = vld [vmem:[#allocation8 + $0x50] sm:$0xff]  ;;  %v1227_v50 = vld [vmem:[#allocation8 + $0x58] sm:$0xff]  ;;  %v2048_v51 = vpack.c.bf16 %v1243_v45, %v1242_v44  ;;  %v2080_v52 = vpack.c.bf16 %v1275_v47, %v1274_v46 }
 0x1e7   :  { %v2050_v59 = vpack.c.bf16 %v1227_v50, %v1226_v13 }
 0x1e8   :  { %1064 = vmatmul.mubr.f32.vlgmr.msra.gmra.mrb[2].mxu0 %v648_v61  ;;  %1206 = vmatmul.mubr.f32.vlgmr.msra.gmra.mrb[2].mxu1 %v648_v61  ;;  %v2052_v61 = vpack.c.bf16 %v1245_v56, %v1244_v55 }
 0x1e9   :  { %2031 = vmatpush3.bf16.msra.mxu0 %v2030_v57  ;;  %2063 = vmatpush3.bf16.msra.mxu1 %v2062_v58  ;;  %v1276_v57 = vld [vmem:[#allocation8 + $0x1e0] sm:$0xff]  ;;  %v1277_v58 = vld [vmem:[#allocation8 + $0x1e8] sm:$0xff] }
 0x1ea   :  { %2033 = vmatprep.subr.bf16.mxu0 %v2032_v22  ;;  %2065 = vmatprep.subr.bf16.mxu1 %v2064_v62  ;;  %v2084_v22 = vpack.c.bf16 %v1277_v58, %v1276_v57  ;;  %v1228_v62 = vld [vmem:[#allocation8 + $0x60] sm:$0xff] }
 0x1eb   :  { %v2054_v1 = vpack.c.bf16 %v1229_v63, %v1228_v62 }
 0x1ed   :  { %2035 = vmatpush3.bf16.msra.mxu0 %v2034_v5  ;;  %2067 = vmatpush3.bf16.msra.mxu1 %v2066_v6  ;;  %v1247_v5 = vld [vmem:[#allocation8 + $0xf8] sm:$0xff]  ;;  %v1278_v6 = vld [vmem:[#allocation8 + $0x1f0] sm:$0xff] }
 0x1ee   :  { %2037 = vmatprep.subr.bf16.mxu0 %v2036_v9  ;;  %2069 = vmatprep.subr.bf16.mxu1 %v2068_v10  ;;  %v2056_v7 = vpack.c.bf16 %v1247_v5, %v1246_v4  ;;  %v1230_v9 = vld [vmem:[#allocation8 + $0x70] sm:$0xff]  ;;  %v1231_v10 = vld [vmem:[#allocation8 + $0x78] sm:$0xff]  ;;  %v2088_v16 = vpack.c.bf16 %v1279_v8, %v1278_v6 }
 0x1ef   :  { %v2058_v17 = vpack.c.bf16 %v1231_v10, %v1230_v9 }
 0x1f1   :  { %2039 = vmatpush3.bf16.msra.mxu0 %v2038_v24  ;;  %2071 = vmatpush3.bf16.msra.mxu1 %v2070_v25  ;;  %v911_v24 = vrot.slane %v906_v21, %v344_v12  ;;  %v919_v25 = vrot.slane %v906_v21, %v352_v23 }
 0x1f2   :  { %2041 = vmatprep.subr.bf16.mxu0 %v2040_v28  ;;  %2073 = vmatprep.subr.bf16.mxu1 %v2072_v29 }
 0x1f5   :  { %2043 = vmatpush3.bf16.msra.mxu0 %v2042_v36  ;;  %2075 = vmatpush3.bf16.msra.mxu1 %v2074_v37 }
 0x1f6   :  { %2045 = vmatprep.subr.bf16.mxu0 %v2044_v40  ;;  %2077 = vmatprep.subr.bf16.mxu1 %v2076_v41 }
 0x1f9   :  { %2047 = vmatpush3.bf16.msra.mxu0 %v2046_v48  ;;  %2079 = vmatpush3.bf16.msra.mxu1 %v2078_v49 }
 0x1fa   :  { %2049 = vmatprep.subr.bf16.mxu0 %v2048_v51  ;;  %2081 = vmatprep.subr.bf16.mxu1 %v2080_v52 }
 0x1fd   :  { %2051 = vmatpush3.bf16.msra.mxu0 %v2050_v59  ;;  %2083 = vmatpush3.bf16.msra.mxu1 %v2082_v60 }
 0x1fe   :  { %2053 = vmatprep.subr.bf16.mxu0 %v2052_v61  ;;  %2085 = vmatprep.subr.bf16.mxu1 %v2084_v22 }
 0x201   :  { %2055 = vmatpush3.bf16.msra.mxu0 %v2054_v1  ;;  %2087 = vmatpush3.bf16.msra.mxu1 %v2086_v3 }
 0x202   :  { %2057 = vmatprep.subr.bf16.mxu0 %v2056_v7  ;;  %2089 = vmatprep.subr.bf16.mxu1 %v2088_v16 }
 0x205   :  { %2059 = vmatpush3.bf16.msra.mxu0 %v2058_v17  ;;  %2091 = vmatpush3.bf16.msra.mxu1 %v2090_v20 }
 0x2bb   :  { %v1065_v28 = vpop.f32.mrb[2].mxu0  ;;  %v1207_v29 = vpop.f32.mrb[2].mxu1 }
 0x2bc   :  { %v2096_v30 = vadd.f32 %v1065_v28, %v911_v24  ;;  %v2098_v31 = vadd.f32 %v1207_v29, %v919_v25  ;;  %v1067_v32 = vpop.f32.mrb[3].mxu0  ;;  %v1209_v33 = vpop.f32.mrb[3].mxu1 }
 0x2bd   :  { %v2097_v34 = vadd.f32 %v1067_v32, %v915_v26  ;;  %v2099_v35 = vadd.f32 %v1209_v33, %v923_v27 }
 0x2be   :  { %v1212_v12 = vmax.f32 %v2096_v30, 0.0  ;;  %v1214_v38 = vmax.f32 %v2098_v31, 0.0 }
 0x2bf   :  { %v1213_v36 = vmax.f32 %v2097_v34, 0.0  ;;  %v1215_v37 = vmax.f32 %v2099_v35, 0.0 }
 0x2c1   :  { %1351 = vmatprep.mubr.f32.mxu0 %v1213_v36  ;;  %1421 = vmatprep.mubr.f32.mxu1 %v1215_v37 }
 0x2c2   :  { %1352 = vmatmul.mubr.f32.vlgmr.msra.gmra.mrb[4].mxu0 %v1212_v12  ;;  %1422 = vmatmul.mubr.f32.vlgmr.msra.gmra.mrb[4].mxu1 %v1214_v38 }
 0x395   :  { %v1478_v14 = vpop.f32.mrb[4].mxu0  ;;  %v1513_v23 = vpop.f32.mrb[4].mxu1 }
 0x396   :  { %v1479_v15 = vpop.f32.mrb[5].mxu0  ;;  %v1514_v39 = vpop.f32.mrb[5].mxu1 }
 0x397   :  { %v1480_v40 = vadd.f32 %v1479_v15, %v1478_v14  ;;  %v1515_v41 = vadd.f32 %v1514_v39, %v1513_v23 }
 0x399   :  { %v1354_v42 = vadd.f32 %v1480_v40, %v1445_v11 }
 0x39b   :  { %v1424_v43 = vadd.f32 %v1515_v41, %v1354_v42 }
 0x39d   :  { %1427 = vst [vmem:[#allocation10] sm:$0xff] %v1424_v43 }
 0x39e   :  { %2216 = shalt.err (!%p2213_p8)
}
 0x39f   :  { %s2217_s6 = scalar_lea.hbm %s2397_s7, 128 }
 0x3a0   :  { %p2218_p9 = scmp.ne.s32.totalorder %s2397_s7, %s2217_s6  ;;  %p2221_p10 = scmp.lt.u32.totalorder %s2217_s6, %s2397_s7 }
 0x3a2   :  { %p2223_p11 = pnand %p2221_p10, %p2218_p9 }
 0x3a4   :  { %2226 = shalt.err (!%p2223_p11)
}
 0x3a5   :  { %1437 = dma.vmem_to_hbm [thread:$0]  %s1435_s30, 128, %s2397_s7, [#allocation4]  }
 0x3a6   :  { %2233 = dma.done.wait [#allocation4], 128  }
 0x3a7   :  { %2234 = vsyncadd [#allocation4], 4294967168 }
 0x3a8   :  { %1441 = vsyncpa [#allocation3], 1 }
 0x3a9   :  { %1442 = vsyncpa [#allocation6], 1 }
 0x3aa   :  { %1443 = vsyncpa [#allocation9], 1 }
 0x3ab   :  { %1444 = vsyncpa [#allocation4], 1 }

</bundles_post_ra>
